<compile_context>
chip_gen: v7x
topology: tpu7x:2x2x1
jax: 0.10.0
libtpu: 0.0.40
codegen_flags: <defaults>
</compile_context>

<pallas_src>
import math
import jax
import jax.numpy as jnp
from jax.experimental import pallas as pl
from jax.experimental.pallas import tpu as pltpu

D_MODEL = 32
N_HEADS = 4
HEAD_DIM = D_MODEL // N_HEADS
D_FF = 4 * D_MODEL
LN_EPS = 1e-5

# Lane offsets inside the packed (D_MODEL, 512) weight buffer (host-pretransposed,
# 128-wide operands placed first so their slices are 128-lane aligned).
_W_SA_VOUT = (0, 128)      # self-attn  fused V*out_proj weight   (D, N_HEADS*D)
_W_CA_VOUT = (128, 256)    # cross-attn fused V*out_proj weight   (D, N_HEADS*D)
_W_FF1 = (256, 384)        # linear1 weight^T                     (D, D_FF)
_W_SA_QK = (384, 448)      # self-attn  fused Q,K projection      (D, 2D)
_W_CA_Q = (448, 480)       # cross-attn Q projection              (D, D)
_W_CA_K = (480, 512)       # cross-attn K projection              (D, D)

# Row indices inside the packed (16, 128) bias / LayerNorm buffer.
_B_SA_QK, _B_SA_OUT, _B_CA_Q, _B_CA_K, _B_CA_OUT, _B_FF1, _B_FF2 = range(7)
_B_N1W, _B_N1B, _B_N2W, _B_N2B, _B_N3W, _B_N3B = range(7, 13)
_BIAS_ROWS = 16


def _row(b_ref, r, width):
    """(1, width) bias / LayerNorm row, read inline at point of use."""
    return b_ref[r:r + 1, 0:width]


def _layer_norm(z, w_row, b_row):
    mu = jnp.mean(z, axis=-1, keepdims=True)
    var = jnp.mean(jnp.square(z - mu), axis=-1, keepdims=True)
    return (z - mu) * jax.lax.rsqrt(var + LN_EPS) * w_row + b_row


def _block_diag_mask(rows, per_q, cols, per_k, n_items):
    """mask[i, j] = (i // per_q == j // per_k), built from iota + compares only."""
    ri = jax.lax.broadcasted_iota(jnp.int32, (rows, cols), 0)
    ci = jax.lax.broadcasted_iota(jnp.int32, (rows, cols), 1)
    m = None
    for b in range(n_items):                               # tiny static unroll
        blk = ((ri >= b * per_q) & (ri < (b + 1) * per_q)
               & (ci >= b * per_k) & (ci < (b + 1) * per_k))
        m = blk if m is None else (m | blk)
    return m


def _mha_fused(q, k, vproj, mask):
    """Multi-head attention with the output projection pre-folded into vproj.

    q: (Rq, D), k: (Rk, D), vproj = kv_rows @ W_vout: (Rk, N_HEADS*D).
    Returns sum_h softmax(q_h k_h^T / sqrt(hd)) @ vproj[:, h*D:(h+1)*D]  -> (Rq, D).
    Cross-batch-item score entries are masked to -1e30 (softmax weight 0 -> exact).
    """
    scale = 1.0 / math.sqrt(HEAD_DIM)
    acc = jnp.zeros((q.shape[0], D_MODEL), jnp.float32)
    # TODO(synk): per-head 8-lane q/k slices remain; a head-batched dot_general needs a
    # lane-splitting reshape whose relayout cost roughly cancels the gain at D=32.
    for h in range(N_HEADS):                               # static unroll over heads
        sl = slice(h * HEAD_DIM, (h + 1) * HEAD_DIM)
        s = jax.lax.dot_general(
            q[:, sl], k[:, sl],
            dimension_numbers=(((1,), (1,)), ((), ())),    # q_h @ k_h^T, no transpose
            preferred_element_type=jnp.float32) * scale
        if mask is not None:
            s = jnp.where(mask, s, jnp.float32(-1e30))
        m = jnp.max(s, axis=-1, keepdims=True)
        e = jnp.exp(s - m)
        denom = jnp.sum(e, axis=-1, keepdims=True)
        p = e * pl.reciprocal(denom, approx=True)          # EUP vrcp, not a VPU divide
        acc = acc + jnp.dot(p, vproj[:, h * D_MODEL:(h + 1) * D_MODEL],
                            preferred_element_type=jnp.float32)
    return acc


def _decoder_layer_kernel(x_ref, mem_ref, wpk_ref, w2T_ref, b_ref, out_ref):
    Bb, Sq, D = x_ref.shape
    _, Sk, _ = mem_ref.shape
    Rq, Rk = Bb * Sq, Bb * Sk

    # Flatten the batch block into the GEMM row (sublane) dimension.
    x = x_ref[...].reshape(Rq, D)
    mem = mem_ref[...].reshape(Rk, D)

    # ---- self-attention: fused Q/K projection + fused V*out projection ----
    qk = (jnp.dot(x, wpk_ref[:, _W_SA_QK[0]:_W_SA_QK[1]],
                  preferred_element_type=jnp.float32)
          + _row(b_ref, _B_SA_QK, 2 * D))
    vproj = jnp.dot(x, wpk_ref[:, _W_SA_VOUT[0]:_W_SA_VOUT[1]],
                    preferred_element_type=jnp.float32)
    self_mask = _block_diag_mask(Rq, Sq, Rq, Sq, Bb) if Bb > 1 else None
    sa = (_mha_fused(qk[:, 0:D], qk[:, D:2 * D], vproj, self_mask)
          + _row(b_ref, _B_SA_OUT, D))
    x = _layer_norm(x + sa, _row(b_ref, _B_N1W, D), _row(b_ref, _B_N1B, D))

    # ---- cross-attention: Q from x, K and fused V*out from memory ----
    q = (jnp.dot(x, wpk_ref[:, _W_CA_Q[0]:_W_CA_Q[1]],
                 preferred_element_type=jnp.float32) + _row(b_ref, _B_CA_Q, D))
    k = (jnp.dot(mem, wpk_ref[:, _W_CA_K[0]:_W_CA_K[1]],
                 preferred_element_type=jnp.float32) + _row(b_ref, _B_CA_K, D))
    vproj = jnp.dot(mem, wpk_ref[:, _W_CA_VOUT[0]:_W_CA_VOUT[1]],
                    preferred_element_type=jnp.float32)
    cross_mask = _block_diag_mask(Rq, Sq, Rk, Sk, Bb) if Bb > 1 else None
    ca = _mha_fused(q, k, vproj, cross_mask) + _row(b_ref, _B_CA_OUT, D)
    x = _layer_norm(x + ca, _row(b_ref, _B_N2W, D), _row(b_ref, _B_N2B, D))

    # ---- feed-forward: relu(x @ w1^T + b1) @ w2^T + b2, residual + norm3 ----
    h = jnp.maximum(jnp.dot(x, wpk_ref[:, _W_FF1[0]:_W_FF1[1]],
                            preferred_element_type=jnp.float32)
                    + _row(b_ref, _B_FF1, D_FF), 0.0)
    y = (jnp.dot(h, w2T_ref[...], preferred_element_type=jnp.float32)
         + _row(b_ref, _B_FF2, D))
    x = _layer_norm(x + y, _row(b_ref, _B_N3W, D), _row(b_ref, _B_N3B, D))

    out_ref[...] = x.reshape(Bb, Sq, D)


def informer_decoder_layer(x, memory, params, block_b=None):
    """x: (B, Sq, D), memory: (B, Sk, D). `params` uses PyTorch conventions
    (nn.Linear weight = (out, in); MHA in_proj_weight = (3D, D)); all weights are
    pre-transposed / fused / packed on the host before entering the kernel."""
    B, Sq, D = x.shape
    _, Sk, _ = memory.shape
    assert D == D_MODEL

    (sa_in_w, sa_in_b, sa_out_w, sa_out_b,
     ca_in_w, ca_in_b, ca_out_w, ca_out_b,
     w1, b1, w2, b2, n1w, n1b, n2w, n2b, n3w, n3b) = params

    def fold_v_out(in_w, out_w):
        # W_vout[:, h*D:(h+1)*D] = Wv_h^T @ Wout_h^T : exact fold of the V projection
        # into the per-head slice of the output projection (one lane-dense matmul).
        wvT, outT = in_w[2 * D:3 * D, :].T, out_w.T
        return jnp.concatenate(
            [wvT[:, h * HEAD_DIM:(h + 1) * HEAD_DIM]
             @ outT[h * HEAD_DIM:(h + 1) * HEAD_DIM, :] for h in range(N_HEADS)],
            axis=1)                                               # (D, N_HEADS*D)

    sa_vout = fold_v_out(sa_in_w, sa_out_w)                        # (32, 128)
    ca_vout = fold_v_out(ca_in_w, ca_out_w)                        # (32, 128)
    sa_qk_wT = sa_in_w[0:2 * D, :].T                               # (32, 64)
    ca_q_wT = ca_in_w[0:D, :].T                                    # (32, 32)
    ca_k_wT = ca_in_w[D:2 * D, :].T                                # (32, 32)

    # Effective output-projection biases with the V bias folded in (exact: softmax
    # rows sum to 1, so P_h @ (1 * b_v_h) @ Wout_h^T == b_v_h @ Wout_h^T).
    sa_out_b_eff = sa_out_b + sa_in_b[:, 2 * D:3 * D] @ sa_out_w.T
    ca_out_b_eff = ca_out_b + ca_in_b[:, 2 * D:3 * D] @ ca_out_w.T

    # One packed (D, 512) weight buffer (single DMA); 128-wide operands 128-aligned.
    wpack = jnp.concatenate(
        [sa_vout, ca_vout, w1.T, sa_qk_wT, ca_q_wT, ca_k_wT], axis=1).astype(jnp.float32)
    w2T = w2.T.astype(jnp.float32)                                 # (D_FF, D)

    # One packed (16, 128) bias / LayerNorm buffer (single DMA); row layout = _B_*.
    def row(r):
        return jnp.pad(r, ((0, 0), (0, 128 - r.shape[1])))
    bpack = jnp.concatenate(
        [row(sa_in_b[:, 0:2 * D]), row(sa_out_b_eff), row(ca_in_b[:, 0:D]),
         row(ca_in_b[:, D:2 * D]), row(ca_out_b_eff), row(b1), row(b2),
         row(n1w), row(n1b), row(n2w), row(n2b), row(n3w), row(n3b)], axis=0)
    bpack = jnp.pad(bpack, ((0, _BIAS_ROWS - bpack.shape[0]), (0, 0))).astype(jnp.float32)

    # Single grid step by default: at these sizes the ~600-cycle per-step pipeline
    # overhead dominates per-step compute on single-TC v5e/v6e, and splitting across
    # the two v7x TensorCores is a wash.  Cap Bb so the batch-flattened attention
    # score block (Bb*Sq x Bb*Sk) stays tiny.
    if block_b is None:
        block_b = B if B <= 8 else next(d for d in (8, 4, 2, 1) if B % d == 0)
    assert B % block_b == 0, "block_b must divide batch"
    Bb = block_b
    grid = (B // Bb,)

    in_specs = [
        pl.BlockSpec((Bb, Sq, D), lambda i: (i, 0, 0)),            # x block
        pl.BlockSpec((Bb, Sk, D), lambda i: (i, 0, 0)),            # memory block
        pl.BlockSpec(wpack.shape, lambda i: (0, 0)),               # packed weights
        pl.BlockSpec(w2T.shape, lambda i: (0, 0)),                 # linear2 weight^T
        pl.BlockSpec(bpack.shape, lambda i: (0, 0)),               # packed biases / LN
    ]

    return pl.pallas_call(
        _decoder_layer_kernel,
        out_shape=jax.ShapeDtypeStruct((B, Sq, D), jnp.float32),
        grid=grid,
        in_specs=in_specs,
        out_specs=pl.BlockSpec((Bb, Sq, D), lambda i: (i, 0, 0)),
        compiler_params=pltpu.CompilerParams(dimension_semantics=("parallel",)),
    )(x, memory, wpack, w2T, bpack)


def reference(x, memory, params):
    """Pure-JAX reference matching the PyTorch module (eval mode, no masks)."""
    (sa_in_w, sa_in_b, sa_out_w, sa_out_b,
     ca_in_w, ca_in_b, ca_out_w, ca_out_b,
     w1, b1, w2, b2, n1w, n1b, n2w, n2b, n3w, n3b) = params

    def mha(q_in, kv_in, in_w, in_b, out_w, out_b):
        D = D_MODEL
        wq, wk, wv = in_w[0:D], in_w[D:2 * D], in_w[2 * D:3 * D]
        bq, bk, bv = in_b[:, 0:D], in_b[:, D:2 * D], in_b[:, 2 * D:3 * D]
        q = q_in @ wq.T + bq
        k = kv_in @ wk.T + bk
        v = kv_in @ wv.T + bv
        outs = []
        for h in range(N_HEADS):
            sl = slice(h * HEAD_DIM, (h + 1) * HEAD_DIM)
            s = (q[:, sl] @ k[:, sl].T) / math.sqrt(HEAD_DIM)
            p = jax.nn.softmax(s, axis=-1)
            outs.append(p @ v[:, sl])
        attn = jnp.concatenate(outs, axis=-1)
        return attn @ out_w.T + out_b

    def ln(z, w, b):
        mu = z.mean(-1, keepdims=True)
        var = ((z - mu) ** 2).mean(-1, keepdims=True)
        return (z - mu) / jnp.sqrt(var + LN_EPS) * w + b

    def one(xb, mb):
        h = mha(xb, xb, sa_in_w, sa_in_b, sa_out_w, sa_out_b)
        xb = ln(xb + h, n1w, n1b)
        h = mha(xb, mb, ca_in_w, ca_in_b, ca_out_w, ca_out_b)
        xb = ln(xb + h, n2w, n2b)
        hh = jnp.maximum(xb @ w1.T + b1, 0.0)
        y = hh @ w2.T + b2
        return ln(xb + y, n3w, n3b)

    return jax.vmap(one)(x, memory)


if __name__ == "__main__":
    key = jax.random.PRNGKey(0)
    B, Sq, Sk = 2, 8, 16
    keys = jax.random.split(key, 16)
    x = jax.random.normal(keys[0], (B, Sq, D_MODEL), jnp.float32)
    memory = jax.random.normal(keys[1], (B, Sk, D_MODEL), jnp.float32)

    s = 0.05
    params = [
        s * jax.random.normal(keys[2], (3 * D_MODEL, D_MODEL)),   # self-attn in_proj_weight
        s * jax.random.normal(keys[3], (1, 3 * D_MODEL)),         # self-attn in_proj_bias
        s * jax.random.normal(keys[4], (D_MODEL, D_MODEL)),       # self-attn out_proj.weight
        s * jax.random.normal(keys[5], (1, D_MODEL)),             # self-attn out_proj.bias
        s * jax.random.normal(keys[6], (3 * D_MODEL, D_MODEL)),   # cross-attn in_proj_weight
        s * jax.random.normal(keys[7], (1, 3 * D_MODEL)),         # cross-attn in_proj_bias
        s * jax.random.normal(keys[8], (D_MODEL, D_MODEL)),       # cross-attn out_proj.weight
        s * jax.random.normal(keys[9], (1, D_MODEL)),             # cross-attn out_proj.bias
        s * jax.random.normal(keys[10], (D_FF, D_MODEL)),         # linear1.weight
        s * jax.random.normal(keys[11], (1, D_FF)),               # linear1.bias
        s * jax.random.normal(keys[12], (D_MODEL, D_FF)),         # linear2.weight
        s * jax.random.normal(keys[13], (1, D_MODEL)),            # linear2.bias
        jnp.ones((1, D_MODEL)), jnp.zeros((1, D_MODEL)),          # norm1 weight/bias
        jnp.ones((1, D_MODEL)), jnp.zeros((1, D_MODEL)),          # norm2 weight/bias
        jnp.ones((1, D_MODEL)), jnp.zeros((1, D_MODEL)),          # norm3 weight/bias
    ]
    params = [p.astype(jnp.float32) for p in params]

    out = informer_decoder_layer(x, memory, params)
    jax.block_until_ready(out)

    ref = reference(x, memory, params)
    assert out.shape == (B, Sq, D_MODEL)
    # Tolerance 2e-3 covers the approx EUP reciprocal in the softmax normalization.
    assert jnp.allclose(out, ref, atol=2e-3, rtol=2e-3), "kernel/reference mismatch"
    print("KERNEL_OK")
</pallas_src>

<mosaic_0001>
module attributes {stable_mosaic.version = 11 : i64} {
  func.func @_decoder_layer_kernel(%arg0: i32, %arg1: memref<2x8x32xf32, #tpu.memory_space<vmem>>, %arg2: memref<2x16x32xf32, #tpu.memory_space<vmem>>, %arg3: memref<32x512xf32, #tpu.memory_space<vmem>>, %arg4: memref<128x32xf32, #tpu.memory_space<vmem>>, %arg5: memref<16x128xf32, #tpu.memory_space<vmem>>, %arg6: memref<2x8x32xf32, #tpu.memory_space<vmem>>) attributes {dimension_semantics = [#tpu.dimension_semantics<parallel>], iteration_bounds = array<i64: 1>, scalar_prefetch = 0 : i64, scratch_operands = 0 : i64, tpu.core_type = #tpu.core_type<tc>, window_params = [{transform_indices = @transform_0, window_bounds = array<i64: 2, 8, 32>}, {transform_indices = @transform_1, window_bounds = array<i64: 2, 16, 32>}, {pipeline_mode = #tpu.pipeline_mode<synchronous>, transform_indices = @transform_2, window_bounds = array<i64: 32, 512>}, {pipeline_mode = #tpu.pipeline_mode<synchronous>, transform_indices = @transform_3, window_bounds = array<i64: 128, 32>}, {pipeline_mode = #tpu.pipeline_mode<synchronous>, transform_indices = @transform_4, window_bounds = array<i64: 16, 128>}, {transform_indices = @transform_5, window_bounds = array<i64: 2, 8, 32>}]} {
    %c0 = arith.constant 0 : index
    %c0_0 = arith.constant 0 : index
    %c0_1 = arith.constant 0 : index
    %0 = vector.load %arg1[%c0, %c0_0, %c0_1] : memref<2x8x32xf32, #tpu.memory_space<vmem>>, vector<2x8x32xf32>
    %1 = vector.shape_cast %0 : vector<2x8x32xf32> to vector<16x32xf32>
    %c0_2 = arith.constant 0 : index
    %c0_3 = arith.constant 0 : index
    %c0_4 = arith.constant 0 : index
    %2 = vector.load %arg2[%c0_2, %c0_3, %c0_4] : memref<2x16x32xf32, #tpu.memory_space<vmem>>, vector<2x16x32xf32>
    %3 = vector.shape_cast %2 : vector<2x16x32xf32> to vector<32x32xf32>
    %c0_5 = arith.constant 0 : index
    %c384 = arith.constant 384 : index
    %4 = vector.load %arg3[%c0_5, %c384] : memref<32x512xf32, #tpu.memory_space<vmem>>, vector<32x64xf32>
    %cst = arith.constant dense<0.000000e+00> : vector<16x64xf32>
    %5 = tpu.matmul %1, %4, %cst {dimension_numbers = #tpu.dot_dimension_numbers<[1], [0], [0], [1], [0, 0, 1, 1], [], []>} : vector<16x32xf32>, vector<32x64xf32>, vector<16x64xf32> -> vector<16x64xf32>
    %c0_6 = arith.constant 0 : index
    %c0_7 = arith.constant 0 : index
    %6 = vector.load %arg5[%c0_6, %c0_7] : memref<16x128xf32, #tpu.memory_space<vmem>>, vector<1x64xf32>
    %7 = vector.broadcast %6 : vector<1x64xf32> to vector<16x64xf32>
    %8 = arith.addf %5, %7 : vector<16x64xf32>
    %c0_8 = arith.constant 0 : index
    %c0_9 = arith.constant 0 : index
    %9 = vector.load %arg3[%c0_8, %c0_9] : memref<32x512xf32, #tpu.memory_space<vmem>>, vector<32x128xf32>
    %cst_10 = arith.constant dense<0.000000e+00> : vector<16x128xf32>
    %10 = tpu.matmul %1, %9, %cst_10 {dimension_numbers = #tpu.dot_dimension_numbers<[1], [0], [0], [1], [0, 0, 1, 1], [], []>} : vector<16x32xf32>, vector<32x128xf32>, vector<16x128xf32> -> vector<16x128xf32>
    %11 = tpu.iota {dimensions = array<i32: 0>} : vector<16x16xi32>
    %12 = tpu.iota {dimensions = array<i32: 1>} : vector<16x16xi32>
    %c0_i32 = arith.constant 0 : i32
    %13 = vector.broadcast %c0_i32 : i32 to vector<16x16xi32>
    %14 = arith.cmpi sge, %11, %13 : vector<16x16xi32>
    %c8_i32 = arith.constant 8 : i32
    %15 = vector.broadcast %c8_i32 : i32 to vector<16x16xi32>
    %16 = arith.cmpi slt, %11, %15 : vector<16x16xi32>
    %17 = arith.andi %14, %16 : vector<16x16xi1>
    %c0_i32_11 = arith.constant 0 : i32
    %18 = vector.broadcast %c0_i32_11 : i32 to vector<16x16xi32>
    %19 = arith.cmpi sge, %12, %18 : vector<16x16xi32>
    %20 = arith.andi %17, %19 : vector<16x16xi1>
    %c8_i32_12 = arith.constant 8 : i32
    %21 = vector.broadcast %c8_i32_12 : i32 to vector<16x16xi32>
    %22 = arith.cmpi slt, %12, %21 : vector<16x16xi32>
    %23 = arith.andi %20, %22 : vector<16x16xi1>
    %c8_i32_13 = arith.constant 8 : i32
    %24 = vector.broadcast %c8_i32_13 : i32 to vector<16x16xi32>
    %25 = arith.cmpi sge, %11, %24 : vector<16x16xi32>
    %c16_i32 = arith.constant 16 : i32
    %26 = vector.broadcast %c16_i32 : i32 to vector<16x16xi32>
    %27 = arith.cmpi slt, %11, %26 : vector<16x16xi32>
    %28 = arith.andi %25, %27 : vector<16x16xi1>
    %c8_i32_14 = arith.constant 8 : i32
    %29 = vector.broadcast %c8_i32_14 : i32 to vector<16x16xi32>
    %30 = arith.cmpi sge, %12, %29 : vector<16x16xi32>
    %31 = arith.andi %28, %30 : vector<16x16xi1>
    %c16_i32_15 = arith.constant 16 : i32
    %32 = vector.broadcast %c16_i32_15 : i32 to vector<16x16xi32>
    %33 = arith.cmpi slt, %12, %32 : vector<16x16xi32>
    %34 = arith.andi %31, %33 : vector<16x16xi1>
    %35 = arith.ori %23, %34 : vector<16x16xi1>
    %36 = vector.extract_strided_slice %8 {offsets = [0, 0], sizes = [16, 32], strides = [1, 1]} : vector<16x64xf32> to vector<16x32xf32>
    %37 = vector.extract_strided_slice %8 {offsets = [0, 32], sizes = [16, 32], strides = [1, 1]} : vector<16x64xf32> to vector<16x32xf32>
    %cst_16 = arith.constant 0.000000e+00 : f32
    %38 = vector.broadcast %cst_16 : f32 to vector<16x32xf32>
    %39 = vector.extract_strided_slice %36 {offsets = [0, 0], sizes = [16, 8], strides = [1, 1]} : vector<16x32xf32> to vector<16x8xf32>
    %40 = vector.extract_strided_slice %37 {offsets = [0, 0], sizes = [16, 8], strides = [1, 1]} : vector<16x32xf32> to vector<16x8xf32>
    %cst_17 = arith.constant dense<0.000000e+00> : vector<16x16xf32>
    %41 = tpu.matmul %39, %40, %cst_17 {dimension_numbers = #tpu.dot_dimension_numbers<[1], [1], [0], [0], [0, 0, 1, 0], [], []>} : vector<16x8xf32>, vector<16x8xf32>, vector<16x16xf32> -> vector<16x16xf32>
    %cst_18 = arith.constant 0.353553385 : f32
    %42 = vector.broadcast %cst_18 : f32 to vector<16x16xf32>
    %43 = arith.mulf %41, %42 : vector<16x16xf32>
    %cst_19 = arith.constant -1.000000e+30 : f32
    %44 = vector.broadcast %cst_19 : f32 to vector<16x16xf32>
    %45 = arith.select %35, %43, %44 : vector<16x16xi1>, vector<16x16xf32>
    %cst_20 = arith.constant dense<0xFF800000> : vector<16xf32>
    %46 = vector.multi_reduction <maximumf>, %45, %cst_20 [1] : vector<16x16xf32> to vector<16xf32>
    %47 = vector.shape_cast %46 : vector<16xf32> to vector<16x1xf32>
    %48 = vector.broadcast %47 : vector<16x1xf32> to vector<16x16xf32>
    %49 = arith.subf %45, %48 : vector<16x16xf32>
    %50 = math.exp %49 : vector<16x16xf32>
    %cst_21 = arith.constant dense<0.000000e+00> : vector<16xf32>
    %51 = vector.multi_reduction <add>, %50, %cst_21 [1] : vector<16x16xf32> to vector<16xf32>
    %52 = vector.shape_cast %51 : vector<16xf32> to vector<16x1xf32>
    %53 = tpu.reciprocal %52 {approx = true} : vector<16x1xf32> -> vector<16x1xf32>
    %54 = vector.broadcast %53 : vector<16x1xf32> to vector<16x16xf32>
    %55 = arith.mulf %50, %54 : vector<16x16xf32>
    %56 = vector.extract_strided_slice %10 {offsets = [0, 0], sizes = [16, 32], strides = [1, 1]} : vector<16x128xf32> to vector<16x32xf32>
    %cst_22 = arith.constant dense<0.000000e+00> : vector<16x32xf32>
    %57 = tpu.matmul %55, %56, %cst_22 {dimension_numbers = #tpu.dot_dimension_numbers<[1], [0], [0], [1], [0, 0, 1, 1], [], []>} : vector<16x16xf32>, vector<16x32xf32>, vector<16x32xf32> -> vector<16x32xf32>
    %58 = arith.addf %38, %57 : vector<16x32xf32>
    %59 = vector.extract_strided_slice %36 {offsets = [0, 8], sizes = [16, 8], strides = [1, 1]} : vector<16x32xf32> to vector<16x8xf32>
    %60 = vector.extract_strided_slice %37 {offsets = [0, 8], sizes = [16, 8], strides = [1, 1]} : vector<16x32xf32> to vector<16x8xf32>
    %cst_23 = arith.constant dense<0.000000e+00> : vector<16x16xf32>
    %61 = tpu.matmul %59, %60, %cst_23 {dimension_numbers = #tpu.dot_dimension_numbers<[1], [1], [0], [0], [0, 0, 1, 0], [], []>} : vector<16x8xf32>, vector<16x8xf32>, vector<16x16xf32> -> vector<16x16xf32>
    %cst_24 = arith.constant 0.353553385 : f32
    %62 = vector.broadcast %cst_24 : f32 to vector<16x16xf32>
    %63 = arith.mulf %61, %62 : vector<16x16xf32>
    %cst_25 = arith.constant -1.000000e+30 : f32
    %64 = vector.broadcast %cst_25 : f32 to vector<16x16xf32>
    %65 = arith.select %35, %63, %64 : vector<16x16xi1>, vector<16x16xf32>
    %cst_26 = arith.constant dense<0xFF800000> : vector<16xf32>
    %66 = vector.multi_reduction <maximumf>, %65, %cst_26 [1] : vector<16x16xf32> to vector<16xf32>
    %67 = vector.shape_cast %66 : vector<16xf32> to vector<16x1xf32>
    %68 = vector.broadcast %67 : vector<16x1xf32> to vector<16x16xf32>
    %69 = arith.subf %65, %68 : vector<16x16xf32>
    %70 = math.exp %69 : vector<16x16xf32>
    %cst_27 = arith.constant dense<0.000000e+00> : vector<16xf32>
    %71 = vector.multi_reduction <add>, %70, %cst_27 [1] : vector<16x16xf32> to vector<16xf32>
    %72 = vector.shape_cast %71 : vector<16xf32> to vector<16x1xf32>
    %73 = tpu.reciprocal %72 {approx = true} : vector<16x1xf32> -> vector<16x1xf32>
    %74 = vector.broadcast %73 : vector<16x1xf32> to vector<16x16xf32>
    %75 = arith.mulf %70, %74 : vector<16x16xf32>
    %76 = vector.extract_strided_slice %10 {offsets = [0, 32], sizes = [16, 32], strides = [1, 1]} : vector<16x128xf32> to vector<16x32xf32>
    %cst_28 = arith.constant dense<0.000000e+00> : vector<16x32xf32>
    %77 = tpu.matmul %75, %76, %cst_28 {dimension_numbers = #tpu.dot_dimension_numbers<[1], [0], [0], [1], [0, 0, 1, 1], [], []>} : vector<16x16xf32>, vector<16x32xf32>, vector<16x32xf32> -> vector<16x32xf32>
    %78 = arith.addf %58, %77 : vector<16x32xf32>
    %79 = vector.extract_strided_slice %36 {offsets = [0, 16], sizes = [16, 8], strides = [1, 1]} : vector<16x32xf32> to vector<16x8xf32>
    %80 = vector.extract_strided_slice %37 {offsets = [0, 16], sizes = [16, 8], strides = [1, 1]} : vector<16x32xf32> to vector<16x8xf32>
    %cst_29 = arith.constant dense<0.000000e+00> : vector<16x16xf32>
    %81 = tpu.matmul %79, %80, %cst_29 {dimension_numbers = #tpu.dot_dimension_numbers<[1], [1], [0], [0], [0, 0, 1, 0], [], []>} : vector<16x8xf32>, vector<16x8xf32>, vector<16x16xf32> -> vector<16x16xf32>
    %cst_30 = arith.constant 0.353553385 : f32
    %82 = vector.broadcast %cst_30 : f32 to vector<16x16xf32>
    %83 = arith.mulf %81, %82 : vector<16x16xf32>
    %cst_31 = arith.constant -1.000000e+30 : f32
    %84 = vector.broadcast %cst_31 : f32 to vector<16x16xf32>
    %85 = arith.select %35, %83, %84 : vector<16x16xi1>, vector<16x16xf32>
    %cst_32 = arith.constant dense<0xFF800000> : vector<16xf32>
    %86 = vector.multi_reduction <maximumf>, %85, %cst_32 [1] : vector<16x16xf32> to vector<16xf32>
    %87 = vector.shape_cast %86 : vector<16xf32> to vector<16x1xf32>
    %88 = vector.broadcast %87 : vector<16x1xf32> to vector<16x16xf32>
    %89 = arith.subf %85, %88 : vector<16x16xf32>
    %90 = math.exp %89 : vector<16x16xf32>
    %cst_33 = arith.constant dense<0.000000e+00> : vector<16xf32>
    %91 = vector.multi_reduction <add>, %90, %cst_33 [1] : vector<16x16xf32> to vector<16xf32>
    %92 = vector.shape_cast %91 : vector<16xf32> to vector<16x1xf32>
    %93 = tpu.reciprocal %92 {approx = true} : vector<16x1xf32> -> vector<16x1xf32>
    %94 = vector.broadcast %93 : vector<16x1xf32> to vector<16x16xf32>
    %95 = arith.mulf %90, %94 : vector<16x16xf32>
    %96 = vector.extract_strided_slice %10 {offsets = [0, 64], sizes = [16, 32], strides = [1, 1]} : vector<16x128xf32> to vector<16x32xf32>
    %cst_34 = arith.constant dense<0.000000e+00> : vector<16x32xf32>
    %97 = tpu.matmul %95, %96, %cst_34 {dimension_numbers = #tpu.dot_dimension_numbers<[1], [0], [0], [1], [0, 0, 1, 1], [], []>} : vector<16x16xf32>, vector<16x32xf32>, vector<16x32xf32> -> vector<16x32xf32>
    %98 = arith.addf %78, %97 : vector<16x32xf32>
    %99 = vector.extract_strided_slice %36 {offsets = [0, 24], sizes = [16, 8], strides = [1, 1]} : vector<16x32xf32> to vector<16x8xf32>
    %100 = vector.extract_strided_slice %37 {offsets = [0, 24], sizes = [16, 8], strides = [1, 1]} : vector<16x32xf32> to vector<16x8xf32>
    %cst_35 = arith.constant dense<0.000000e+00> : vector<16x16xf32>
    %101 = tpu.matmul %99, %100, %cst_35 {dimension_numbers = #tpu.dot_dimension_numbers<[1], [1], [0], [0], [0, 0, 1, 0], [], []>} : vector<16x8xf32>, vector<16x8xf32>, vector<16x16xf32> -> vector<16x16xf32>
    %cst_36 = arith.constant 0.353553385 : f32
    %102 = vector.broadcast %cst_36 : f32 to vector<16x16xf32>
    %103 = arith.mulf %101, %102 : vector<16x16xf32>
    %cst_37 = arith.constant -1.000000e+30 : f32
    %104 = vector.broadcast %cst_37 : f32 to vector<16x16xf32>
    %105 = arith.select %35, %103, %104 : vector<16x16xi1>, vector<16x16xf32>
    %cst_38 = arith.constant dense<0xFF800000> : vector<16xf32>
    %106 = vector.multi_reduction <maximumf>, %105, %cst_38 [1] : vector<16x16xf32> to vector<16xf32>
    %107 = vector.shape_cast %106 : vector<16xf32> to vector<16x1xf32>
    %108 = vector.broadcast %107 : vector<16x1xf32> to vector<16x16xf32>
    %109 = arith.subf %105, %108 : vector<16x16xf32>
    %110 = math.exp %109 : vector<16x16xf32>
    %cst_39 = arith.constant dense<0.000000e+00> : vector<16xf32>
    %111 = vector.multi_reduction <add>, %110, %cst_39 [1] : vector<16x16xf32> to vector<16xf32>
    %112 = vector.shape_cast %111 : vector<16xf32> to vector<16x1xf32>
    %113 = tpu.reciprocal %112 {approx = true} : vector<16x1xf32> -> vector<16x1xf32>
    %114 = vector.broadcast %113 : vector<16x1xf32> to vector<16x16xf32>
    %115 = arith.mulf %110, %114 : vector<16x16xf32>
    %116 = vector.extract_strided_slice %10 {offsets = [0, 96], sizes = [16, 32], strides = [1, 1]} : vector<16x128xf32> to vector<16x32xf32>
    %cst_40 = arith.constant dense<0.000000e+00> : vector<16x32xf32>
    %117 = tpu.matmul %115, %116, %cst_40 {dimension_numbers = #tpu.dot_dimension_numbers<[1], [0], [0], [1], [0, 0, 1, 1], [], []>} : vector<16x16xf32>, vector<16x32xf32>, vector<16x32xf32> -> vector<16x32xf32>
    %118 = arith.addf %98, %117 : vector<16x32xf32>
    %c1 = arith.constant 1 : index
    %c0_41 = arith.constant 0 : index
    %119 = vector.load %arg5[%c1, %c0_41] : memref<16x128xf32, #tpu.memory_space<vmem>>, vector<1x32xf32>
    %120 = vector.broadcast %119 : vector<1x32xf32> to vector<16x32xf32>
    %121 = arith.addf %118, %120 : vector<16x32xf32>
    %122 = arith.addf %1, %121 : vector<16x32xf32>
    %c7 = arith.constant 7 : index
    %c0_42 = arith.constant 0 : index
    %123 = vector.load %arg5[%c7, %c0_42] : memref<16x128xf32, #tpu.memory_space<vmem>>, vector<1x32xf32>
    %c8 = arith.constant 8 : index
    %c0_43 = arith.constant 0 : index
    %124 = vector.load %arg5[%c8, %c0_43] : memref<16x128xf32, #tpu.memory_space<vmem>>, vector<1x32xf32>
    %cst_44 = arith.constant dense<0.000000e+00> : vector<16xf32>
    %125 = vector.multi_reduction <add>, %122, %cst_44 [1] : vector<16x32xf32> to vector<16xf32>
    %126 = vector.shape_cast %125 : vector<16xf32> to vector<16x1xf32>
    %cst_45 = arith.constant 3.200000e+01 : f32
    %127 = vector.broadcast %cst_45 : f32 to vector<16x1xf32>
    %128 = arith.divf %126, %127 : vector<16x1xf32>
    %129 = vector.broadcast %128 : vector<16x1xf32> to vector<16x32xf32>
    %130 = arith.subf %122, %129 : vector<16x32xf32>
    %131 = arith.mulf %130, %130 : vector<16x32xf32>
    %cst_46 = arith.constant dense<0.000000e+00> : vector<16xf32>
    %132 = vector.multi_reduction <add>, %131, %cst_46 [1] : vector<16x32xf32> to vector<16xf32>
    %133 = vector.shape_cast %132 : vector<16xf32> to vector<16x1xf32>
    %cst_47 = arith.constant 3.200000e+01 : f32
    %134 = vector.broadcast %cst_47 : f32 to vector<16x1xf32>
    %135 = arith.divf %133, %134 : vector<16x1xf32>
    %136 = vector.broadcast %128 : vector<16x1xf32> to vector<16x32xf32>
    %137 = arith.subf %122, %136 : vector<16x32xf32>
    %cst_48 = arith.constant 9.99999974E-6 : f32
    %138 = vector.broadcast %cst_48 : f32 to vector<16x1xf32>
    %139 = arith.addf %135, %138 : vector<16x1xf32>
    %140 = math.rsqrt %139 : vector<16x1xf32>
    %141 = vector.broadcast %140 : vector<16x1xf32> to vector<16x32xf32>
    %142 = arith.mulf %137, %141 : vector<16x32xf32>
    %143 = vector.broadcast %123 : vector<1x32xf32> to vector<16x32xf32>
    %144 = arith.mulf %142, %143 : vector<16x32xf32>
    %145 = vector.broadcast %124 : vector<1x32xf32> to vector<16x32xf32>
    %146 = arith.addf %144, %145 : vector<16x32xf32>
    %c0_49 = arith.constant 0 : index
    %c448 = arith.constant 448 : index
    %147 = vector.load %arg3[%c0_49, %c448] : memref<32x512xf32, #tpu.memory_space<vmem>>, vector<32x32xf32>
    %cst_50 = arith.constant dense<0.000000e+00> : vector<16x32xf32>
    %148 = tpu.matmul %146, %147, %cst_50 {dimension_numbers = #tpu.dot_dimension_numbers<[1], [0], [0], [1], [0, 0, 1, 1], [], []>} : vector<16x32xf32>, vector<32x32xf32>, vector<16x32xf32> -> vector<16x32xf32>
    %c2 = arith.constant 2 : index
    %c0_51 = arith.constant 0 : index
    %149 = vector.load %arg5[%c2, %c0_51] : memref<16x128xf32, #tpu.memory_space<vmem>>, vector<1x32xf32>
    %150 = vector.broadcast %149 : vector<1x32xf32> to vector<16x32xf32>
    %151 = arith.addf %148, %150 : vector<16x32xf32>
    %c0_52 = arith.constant 0 : index
    %c480 = arith.constant 480 : index
    %152 = vector.load %arg3[%c0_52, %c480] : memref<32x512xf32, #tpu.memory_space<vmem>>, vector<32x32xf32>
    %cst_53 = arith.constant dense<0.000000e+00> : vector<32x32xf32>
    %153 = tpu.matmul %3, %152, %cst_53 {dimension_numbers = #tpu.dot_dimension_numbers<[1], [0], [0], [1], [0, 0, 1, 1], [], []>} : vector<32x32xf32>, vector<32x32xf32>, vector<32x32xf32> -> vector<32x32xf32>
    %c3 = arith.constant 3 : index
    %c0_54 = arith.constant 0 : index
    %154 = vector.load %arg5[%c3, %c0_54] : memref<16x128xf32, #tpu.memory_space<vmem>>, vector<1x32xf32>
    %155 = vector.broadcast %154 : vector<1x32xf32> to vector<32x32xf32>
    %156 = arith.addf %153, %155 : vector<32x32xf32>
    %c0_55 = arith.constant 0 : index
    %c128 = arith.constant 128 : index
    %157 = vector.load %arg3[%c0_55, %c128] : memref<32x512xf32, #tpu.memory_space<vmem>>, vector<32x128xf32>
    %cst_56 = arith.constant dense<0.000000e+00> : vector<32x128xf32>
    %158 = tpu.matmul %3, %157, %cst_56 {dimension_numbers = #tpu.dot_dimension_numbers<[1], [0], [0], [1], [0, 0, 1, 1], [], []>} : vector<32x32xf32>, vector<32x128xf32>, vector<32x128xf32> -> vector<32x128xf32>
    %159 = tpu.iota {dimensions = array<i32: 0>} : vector<16x32xi32>
    %160 = tpu.iota {dimensions = array<i32: 1>} : vector<16x32xi32>
    %c0_i32_57 = arith.constant 0 : i32
    %161 = vector.broadcast %c0_i32_57 : i32 to vector<16x32xi32>
    %162 = arith.cmpi sge, %159, %161 : vector<16x32xi32>
    %c8_i32_58 = arith.constant 8 : i32
    %163 = vector.broadcast %c8_i32_58 : i32 to vector<16x32xi32>
    %164 = arith.cmpi slt, %159, %163 : vector<16x32xi32>
    %165 = arith.andi %162, %164 : vector<16x32xi1>
    %c0_i32_59 = arith.constant 0 : i32
    %166 = vector.broadcast %c0_i32_59 : i32 to vector<16x32xi32>
    %167 = arith.cmpi sge, %160, %166 : vector<16x32xi32>
    %168 = arith.andi %165, %167 : vector<16x32xi1>
    %c16_i32_60 = arith.constant 16 : i32
    %169 = vector.broadcast %c16_i32_60 : i32 to vector<16x32xi32>
    %170 = arith.cmpi slt, %160, %169 : vector<16x32xi32>
    %171 = arith.andi %168, %170 : vector<16x32xi1>
    %c8_i32_61 = arith.constant 8 : i32
    %172 = vector.broadcast %c8_i32_61 : i32 to vector<16x32xi32>
    %173 = arith.cmpi sge, %159, %172 : vector<16x32xi32>
    %c16_i32_62 = arith.constant 16 : i32
    %174 = vector.broadcast %c16_i32_62 : i32 to vector<16x32xi32>
    %175 = arith.cmpi slt, %159, %174 : vector<16x32xi32>
    %176 = arith.andi %173, %175 : vector<16x32xi1>
    %c16_i32_63 = arith.constant 16 : i32
    %177 = vector.broadcast %c16_i32_63 : i32 to vector<16x32xi32>
    %178 = arith.cmpi sge, %160, %177 : vector<16x32xi32>
    %179 = arith.andi %176, %178 : vector<16x32xi1>
    %c32_i32 = arith.constant 32 : i32
    %180 = vector.broadcast %c32_i32 : i32 to vector<16x32xi32>
    %181 = arith.cmpi slt, %160, %180 : vector<16x32xi32>
    %182 = arith.andi %179, %181 : vector<16x32xi1>
    %183 = arith.ori %171, %182 : vector<16x32xi1>
    %cst_64 = arith.constant 0.000000e+00 : f32
    %184 = vector.broadcast %cst_64 : f32 to vector<16x32xf32>
    %185 = vector.extract_strided_slice %151 {offsets = [0, 0], sizes = [16, 8], strides = [1, 1]} : vector<16x32xf32> to vector<16x8xf32>
    %186 = vector.extract_strided_slice %156 {offsets = [0, 0], sizes = [32, 8], strides = [1, 1]} : vector<32x32xf32> to vector<32x8xf32>
    %cst_65 = arith.constant dense<0.000000e+00> : vector<16x32xf32>
    %187 = tpu.matmul %185, %186, %cst_65 {dimension_numbers = #tpu.dot_dimension_numbers<[1], [1], [0], [0], [0, 0, 1, 0], [], []>} : vector<16x8xf32>, vector<32x8xf32>, vector<16x32xf32> -> vector<16x32xf32>
    %cst_66 = arith.constant 0.353553385 : f32
    %188 = vector.broadcast %cst_66 : f32 to vector<16x32xf32>
    %189 = arith.mulf %187, %188 : vector<16x32xf32>
    %cst_67 = arith.constant -1.000000e+30 : f32
    %190 = vector.broadcast %cst_67 : f32 to vector<16x32xf32>
    %191 = arith.select %183, %189, %190 : vector<16x32xi1>, vector<16x32xf32>
    %cst_68 = arith.constant dense<0xFF800000> : vector<16xf32>
    %192 = vector.multi_reduction <maximumf>, %191, %cst_68 [1] : vector<16x32xf32> to vector<16xf32>
    %193 = vector.shape_cast %192 : vector<16xf32> to vector<16x1xf32>
    %194 = vector.broadcast %193 : vector<16x1xf32> to vector<16x32xf32>
    %195 = arith.subf %191, %194 : vector<16x32xf32>
    %196 = math.exp %195 : vector<16x32xf32>
    %cst_69 = arith.constant dense<0.000000e+00> : vector<16xf32>
    %197 = vector.multi_reduction <add>, %196, %cst_69 [1] : vector<16x32xf32> to vector<16xf32>
    %198 = vector.shape_cast %197 : vector<16xf32> to vector<16x1xf32>
    %199 = tpu.reciprocal %198 {approx = true} : vector<16x1xf32> -> vector<16x1xf32>
    %200 = vector.broadcast %199 : vector<16x1xf32> to vector<16x32xf32>
    %201 = arith.mulf %196, %200 : vector<16x32xf32>
    %202 = vector.extract_strided_slice %158 {offsets = [0, 0], sizes = [32, 32], strides = [1, 1]} : vector<32x128xf32> to vector<32x32xf32>
    %cst_70 = arith.constant dense<0.000000e+00> : vector<16x32xf32>
    %203 = tpu.matmul %201, %202, %cst_70 {dimension_numbers = #tpu.dot_dimension_numbers<[1], [0], [0], [1], [0, 0, 1, 1], [], []>} : vector<16x32xf32>, vector<32x32xf32>, vector<16x32xf32> -> vector<16x32xf32>
    %204 = arith.addf %184, %203 : vector<16x32xf32>
    %205 = vector.extract_strided_slice %151 {offsets = [0, 8], sizes = [16, 8], strides = [1, 1]} : vector<16x32xf32> to vector<16x8xf32>
    %206 = vector.extract_strided_slice %156 {offsets = [0, 8], sizes = [32, 8], strides = [1, 1]} : vector<32x32xf32> to vector<32x8xf32>
    %cst_71 = arith.constant dense<0.000000e+00> : vector<16x32xf32>
    %207 = tpu.matmul %205, %206, %cst_71 {dimension_numbers = #tpu.dot_dimension_numbers<[1], [1], [0], [0], [0, 0, 1, 0], [], []>} : vector<16x8xf32>, vector<32x8xf32>, vector<16x32xf32> -> vector<16x32xf32>
    %cst_72 = arith.constant 0.353553385 : f32
    %208 = vector.broadcast %cst_72 : f32 to vector<16x32xf32>
    %209 = arith.mulf %207, %208 : vector<16x32xf32>
    %cst_73 = arith.constant -1.000000e+30 : f32
    %210 = vector.broadcast %cst_73 : f32 to vector<16x32xf32>
    %211 = arith.select %183, %209, %210 : vector<16x32xi1>, vector<16x32xf32>
    %cst_74 = arith.constant dense<0xFF800000> : vector<16xf32>
    %212 = vector.multi_reduction <maximumf>, %211, %cst_74 [1] : vector<16x32xf32> to vector<16xf32>
    %213 = vector.shape_cast %212 : vector<16xf32> to vector<16x1xf32>
    %214 = vector.broadcast %213 : vector<16x1xf32> to vector<16x32xf32>
    %215 = arith.subf %211, %214 : vector<16x32xf32>
    %216 = math.exp %215 : vector<16x32xf32>
    %cst_75 = arith.constant dense<0.000000e+00> : vector<16xf32>
    %217 = vector.multi_reduction <add>, %216, %cst_75 [1] : vector<16x32xf32> to vector<16xf32>
    %218 = vector.shape_cast %217 : vector<16xf32> to vector<16x1xf32>
    %219 = tpu.reciprocal %218 {approx = true} : vector<16x1xf32> -> vector<16x1xf32>
    %220 = vector.broadcast %219 : vector<16x1xf32> to vector<16x32xf32>
    %221 = arith.mulf %216, %220 : vector<16x32xf32>
    %222 = vector.extract_strided_slice %158 {offsets = [0, 32], sizes = [32, 32], strides = [1, 1]} : vector<32x128xf32> to vector<32x32xf32>
    %cst_76 = arith.constant dense<0.000000e+00> : vector<16x32xf32>
    %223 = tpu.matmul %221, %222, %cst_76 {dimension_numbers = #tpu.dot_dimension_numbers<[1], [0], [0], [1], [0, 0, 1, 1], [], []>} : vector<16x32xf32>, vector<32x32xf32>, vector<16x32xf32> -> vector<16x32xf32>
    %224 = arith.addf %204, %223 : vector<16x32xf32>
    %225 = vector.extract_strided_slice %151 {offsets = [0, 16], sizes = [16, 8], strides = [1, 1]} : vector<16x32xf32> to vector<16x8xf32>
    %226 = vector.extract_strided_slice %156 {offsets = [0, 16], sizes = [32, 8], strides = [1, 1]} : vector<32x32xf32> to vector<32x8xf32>
    %cst_77 = arith.constant dense<0.000000e+00> : vector<16x32xf32>
    %227 = tpu.matmul %225, %226, %cst_77 {dimension_numbers = #tpu.dot_dimension_numbers<[1], [1], [0], [0], [0, 0, 1, 0], [], []>} : vector<16x8xf32>, vector<32x8xf32>, vector<16x32xf32> -> vector<16x32xf32>
    %cst_78 = arith.constant 0.353553385 : f32
    %228 = vector.broadcast %cst_78 : f32 to vector<16x32xf32>
    %229 = arith.mulf %227, %228 : vector<16x32xf32>
    %cst_79 = arith.constant -1.000000e+30 : f32
    %230 = vector.broadcast %cst_79 : f32 to vector<16x32xf32>
    %231 = arith.select %183, %229, %230 : vector<16x32xi1>, vector<16x32xf32>
    %cst_80 = arith.constant dense<0xFF800000> : vector<16xf32>
    %232 = vector.multi_reduction <maximumf>, %231, %cst_80 [1] : vector<16x32xf32> to vector<16xf32>
    %233 = vector.shape_cast %232 : vector<16xf32> to vector<16x1xf32>
    %234 = vector.broadcast %233 : vector<16x1xf32> to vector<16x32xf32>
    %235 = arith.subf %231, %234 : vector<16x32xf32>
    %236 = math.exp %235 : vector<16x32xf32>
    %cst_81 = arith.constant dense<0.000000e+00> : vector<16xf32>
    %237 = vector.multi_reduction <add>, %236, %cst_81 [1] : vector<16x32xf32> to vector<16xf32>
    %238 = vector.shape_cast %237 : vector<16xf32> to vector<16x1xf32>
    %239 = tpu.reciprocal %238 {approx = true} : vector<16x1xf32> -> vector<16x1xf32>
    %240 = vector.broadcast %239 : vector<16x1xf32> to vector<16x32xf32>
    %241 = arith.mulf %236, %240 : vector<16x32xf32>
    %242 = vector.extract_strided_slice %158 {offsets = [0, 64], sizes = [32, 32], strides = [1, 1]} : vector<32x128xf32> to vector<32x32xf32>
    %cst_82 = arith.constant dense<0.000000e+00> : vector<16x32xf32>
    %243 = tpu.matmul %241, %242, %cst_82 {dimension_numbers = #tpu.dot_dimension_numbers<[1], [0], [0], [1], [0, 0, 1, 1], [], []>} : vector<16x32xf32>, vector<32x32xf32>, vector<16x32xf32> -> vector<16x32xf32>
    %244 = arith.addf %224, %243 : vector<16x32xf32>
    %245 = vector.extract_strided_slice %151 {offsets = [0, 24], sizes = [16, 8], strides = [1, 1]} : vector<16x32xf32> to vector<16x8xf32>
    %246 = vector.extract_strided_slice %156 {offsets = [0, 24], sizes = [32, 8], strides = [1, 1]} : vector<32x32xf32> to vector<32x8xf32>
    %cst_83 = arith.constant dense<0.000000e+00> : vector<16x32xf32>
    %247 = tpu.matmul %245, %246, %cst_83 {dimension_numbers = #tpu.dot_dimension_numbers<[1], [1], [0], [0], [0, 0, 1, 0], [], []>} : vector<16x8xf32>, vector<32x8xf32>, vector<16x32xf32> -> vector<16x32xf32>
    %cst_84 = arith.constant 0.353553385 : f32
    %248 = vector.broadcast %cst_84 : f32 to vector<16x32xf32>
    %249 = arith.mulf %247, %248 : vector<16x32xf32>
    %cst_85 = arith.constant -1.000000e+30 : f32
    %250 = vector.broadcast %cst_85 : f32 to vector<16x32xf32>
    %251 = arith.select %183, %249, %250 : vector<16x32xi1>, vector<16x32xf32>
    %cst_86 = arith.constant dense<0xFF800000> : vector<16xf32>
    %252 = vector.multi_reduction <maximumf>, %251, %cst_86 [1] : vector<16x32xf32> to vector<16xf32>
    %253 = vector.shape_cast %252 : vector<16xf32> to vector<16x1xf32>
    %254 = vector.broadcast %253 : vector<16x1xf32> to vector<16x32xf32>
    %255 = arith.subf %251, %254 : vector<16x32xf32>
    %256 = math.exp %255 : vector<16x32xf32>
    %cst_87 = arith.constant dense<0.000000e+00> : vector<16xf32>
    %257 = vector.multi_reduction <add>, %256, %cst_87 [1] : vector<16x32xf32> to vector<16xf32>
    %258 = vector.shape_cast %257 : vector<16xf32> to vector<16x1xf32>
    %259 = tpu.reciprocal %258 {approx = true} : vector<16x1xf32> -> vector<16x1xf32>
    %260 = vector.broadcast %259 : vector<16x1xf32> to vector<16x32xf32>
    %261 = arith.mulf %256, %260 : vector<16x32xf32>
    %262 = vector.extract_strided_slice %158 {offsets = [0, 96], sizes = [32, 32], strides = [1, 1]} : vector<32x128xf32> to vector<32x32xf32>
    %cst_88 = arith.constant dense<0.000000e+00> : vector<16x32xf32>
    %263 = tpu.matmul %261, %262, %cst_88 {dimension_numbers = #tpu.dot_dimension_numbers<[1], [0], [0], [1], [0, 0, 1, 1], [], []>} : vector<16x32xf32>, vector<32x32xf32>, vector<16x32xf32> -> vector<16x32xf32>
    %264 = arith.addf %244, %263 : vector<16x32xf32>
    %c4 = arith.constant 4 : index
    %c0_89 = arith.constant 0 : index
    %265 = vector.load %arg5[%c4, %c0_89] : memref<16x128xf32, #tpu.memory_space<vmem>>, vector<1x32xf32>
    %266 = vector.broadcast %265 : vector<1x32xf32> to vector<16x32xf32>
    %267 = arith.addf %264, %266 : vector<16x32xf32>
    %268 = arith.addf %146, %267 : vector<16x32xf32>
    %c9 = arith.constant 9 : index
    %c0_90 = arith.constant 0 : index
    %269 = vector.load %arg5[%c9, %c0_90] : memref<16x128xf32, #tpu.memory_space<vmem>>, vector<1x32xf32>
    %c10 = arith.constant 10 : index
    %c0_91 = arith.constant 0 : index
    %270 = vector.load %arg5[%c10, %c0_91] : memref<16x128xf32, #tpu.memory_space<vmem>>, vector<1x32xf32>
    %cst_92 = arith.constant dense<0.000000e+00> : vector<16xf32>
    %271 = vector.multi_reduction <add>, %268, %cst_92 [1] : vector<16x32xf32> to vector<16xf32>
    %272 = vector.shape_cast %271 : vector<16xf32> to vector<16x1xf32>
    %cst_93 = arith.constant 3.200000e+01 : f32
    %273 = vector.broadcast %cst_93 : f32 to vector<16x1xf32>
    %274 = arith.divf %272, %273 : vector<16x1xf32>
    %275 = vector.broadcast %274 : vector<16x1xf32> to vector<16x32xf32>
    %276 = arith.subf %268, %275 : vector<16x32xf32>
    %277 = arith.mulf %276, %276 : vector<16x32xf32>
    %cst_94 = arith.constant dense<0.000000e+00> : vector<16xf32>
    %278 = vector.multi_reduction <add>, %277, %cst_94 [1] : vector<16x32xf32> to vector<16xf32>
    %279 = vector.shape_cast %278 : vector<16xf32> to vector<16x1xf32>
    %cst_95 = arith.constant 3.200000e+01 : f32
    %280 = vector.broadcast %cst_95 : f32 to vector<16x1xf32>
    %281 = arith.divf %279, %280 : vector<16x1xf32>
    %282 = vector.broadcast %274 : vector<16x1xf32> to vector<16x32xf32>
    %283 = arith.subf %268, %282 : vector<16x32xf32>
    %cst_96 = arith.constant 9.99999974E-6 : f32
    %284 = vector.broadcast %cst_96 : f32 to vector<16x1xf32>
    %285 = arith.addf %281, %284 : vector<16x1xf32>
    %286 = math.rsqrt %285 : vector<16x1xf32>
    %287 = vector.broadcast %286 : vector<16x1xf32> to vector<16x32xf32>
    %288 = arith.mulf %283, %287 : vector<16x32xf32>
    %289 = vector.broadcast %269 : vector<1x32xf32> to vector<16x32xf32>
    %290 = arith.mulf %288, %289 : vector<16x32xf32>
    %291 = vector.broadcast %270 : vector<1x32xf32> to vector<16x32xf32>
    %292 = arith.addf %290, %291 : vector<16x32xf32>
    %c0_97 = arith.constant 0 : index
    %c256 = arith.constant 256 : index
    %293 = vector.load %arg3[%c0_97, %c256] : memref<32x512xf32, #tpu.memory_space<vmem>>, vector<32x128xf32>
    %cst_98 = arith.constant dense<0.000000e+00> : vector<16x128xf32>
    %294 = tpu.matmul %292, %293, %cst_98 {dimension_numbers = #tpu.dot_dimension_numbers<[1], [0], [0], [1], [0, 0, 1, 1], [], []>} : vector<16x32xf32>, vector<32x128xf32>, vector<16x128xf32> -> vector<16x128xf32>
    %c5 = arith.constant 5 : index
    %c0_99 = arith.constant 0 : index
    %295 = vector.load %arg5[%c5, %c0_99] : memref<16x128xf32, #tpu.memory_space<vmem>>, vector<1x128xf32>
    %296 = vector.broadcast %295 : vector<1x128xf32> to vector<16x128xf32>
    %297 = arith.addf %294, %296 : vector<16x128xf32>
    %cst_100 = arith.constant 0.000000e+00 : f32
    %298 = vector.broadcast %cst_100 : f32 to vector<16x128xf32>
    %299 = arith.maximumf %297, %298 : vector<16x128xf32>
    %c0_101 = arith.constant 0 : index
    %c0_102 = arith.constant 0 : index
    %300 = vector.load %arg4[%c0_101, %c0_102] : memref<128x32xf32, #tpu.memory_space<vmem>>, vector<128x32xf32>
    %cst_103 = arith.constant dense<0.000000e+00> : vector<16x32xf32>
    %301 = tpu.matmul %299, %300, %cst_103 {dimension_numbers = #tpu.dot_dimension_numbers<[1], [0], [0], [1], [0, 0, 1, 1], [], []>} : vector<16x128xf32>, vector<128x32xf32>, vector<16x32xf32> -> vector<16x32xf32>
    %c6 = arith.constant 6 : index
    %c0_104 = arith.constant 0 : index
    %302 = vector.load %arg5[%c6, %c0_104] : memref<16x128xf32, #tpu.memory_space<vmem>>, vector<1x32xf32>
    %303 = vector.broadcast %302 : vector<1x32xf32> to vector<16x32xf32>
    %304 = arith.addf %301, %303 : vector<16x32xf32>
    %305 = arith.addf %292, %304 : vector<16x32xf32>
    %c11 = arith.constant 11 : index
    %c0_105 = arith.constant 0 : index
    %306 = vector.load %arg5[%c11, %c0_105] : memref<16x128xf32, #tpu.memory_space<vmem>>, vector<1x32xf32>
    %c12 = arith.constant 12 : index
    %c0_106 = arith.constant 0 : index
    %307 = vector.load %arg5[%c12, %c0_106] : memref<16x128xf32, #tpu.memory_space<vmem>>, vector<1x32xf32>
    %cst_107 = arith.constant dense<0.000000e+00> : vector<16xf32>
    %308 = vector.multi_reduction <add>, %305, %cst_107 [1] : vector<16x32xf32> to vector<16xf32>
    %309 = vector.shape_cast %308 : vector<16xf32> to vector<16x1xf32>
    %cst_108 = arith.constant 3.200000e+01 : f32
    %310 = vector.broadcast %cst_108 : f32 to vector<16x1xf32>
    %311 = arith.divf %309, %310 : vector<16x1xf32>
    %312 = vector.broadcast %311 : vector<16x1xf32> to vector<16x32xf32>
    %313 = arith.subf %305, %312 : vector<16x32xf32>
    %314 = arith.mulf %313, %313 : vector<16x32xf32>
    %cst_109 = arith.constant dense<0.000000e+00> : vector<16xf32>
    %315 = vector.multi_reduction <add>, %314, %cst_109 [1] : vector<16x32xf32> to vector<16xf32>
    %316 = vector.shape_cast %315 : vector<16xf32> to vector<16x1xf32>
    %cst_110 = arith.constant 3.200000e+01 : f32
    %317 = vector.broadcast %cst_110 : f32 to vector<16x1xf32>
    %318 = arith.divf %316, %317 : vector<16x1xf32>
    %319 = vector.broadcast %311 : vector<16x1xf32> to vector<16x32xf32>
    %320 = arith.subf %305, %319 : vector<16x32xf32>
    %cst_111 = arith.constant 9.99999974E-6 : f32
    %321 = vector.broadcast %cst_111 : f32 to vector<16x1xf32>
    %322 = arith.addf %318, %321 : vector<16x1xf32>
    %323 = math.rsqrt %322 : vector<16x1xf32>
    %324 = vector.broadcast %323 : vector<16x1xf32> to vector<16x32xf32>
    %325 = arith.mulf %320, %324 : vector<16x32xf32>
    %326 = vector.broadcast %306 : vector<1x32xf32> to vector<16x32xf32>
    %327 = arith.mulf %325, %326 : vector<16x32xf32>
    %328 = vector.broadcast %307 : vector<1x32xf32> to vector<16x32xf32>
    %329 = arith.addf %327, %328 : vector<16x32xf32>
    %330 = vector.shape_cast %329 : vector<16x32xf32> to vector<2x8x32xf32>
    %c0_112 = arith.constant 0 : index
    %c0_113 = arith.constant 0 : index
    %c0_114 = arith.constant 0 : index
    %331 = vector.load %arg6[%c0_112, %c0_113, %c0_114] : memref<2x8x32xf32, #tpu.memory_space<vmem>>, vector<2x8x32xf32>
    tpu.vector_store %arg6[%c0_112, %c0_113, %c0_114], %330 {strides = array<i32>} : memref<2x8x32xf32, #tpu.memory_space<vmem>>, vector<2x8x32xf32>,
    return
  }
  func.func @transform_0(%arg0: i32) -> (i32, i32, i32) {
    %c0_i32 = arith.constant 0 : i32
    %c0_i32_0 = arith.constant 0 : i32
    %c0_i32_1 = arith.constant 0 : i32
    return %arg0, %c0_i32, %c0_i32_0 : i32, i32, i32
  }
  func.func @transform_1(%arg0: i32) -> (i32, i32, i32) {
    %c0_i32 = arith.constant 0 : i32
    %c0_i32_0 = arith.constant 0 : i32
    %c0_i32_1 = arith.constant 0 : i32
    return %arg0, %c0_i32, %c0_i32_0 : i32, i32, i32
  }
  func.func @transform_2(%arg0: i32) -> (i32, i32) {
    %c0_i32 = arith.constant 0 : i32
    %c0_i32_0 = arith.constant 0 : i32
    %c0_i32_1 = arith.constant 0 : i32
    return %c0_i32, %c0_i32_0 : i32, i32
  }
  func.func @transform_3(%arg0: i32) -> (i32, i32) {
    %c0_i32 = arith.constant 0 : i32
    %c0_i32_0 = arith.constant 0 : i32
    %c0_i32_1 = arith.constant 0 : i32
    return %c0_i32, %c0_i32_0 : i32, i32
  }
  func.func @transform_4(%arg0: i32) -> (i32, i32) {
    %c0_i32 = arith.constant 0 : i32
    %c0_i32_0 = arith.constant 0 : i32
    %c0_i32_1 = arith.constant 0 : i32
    return %c0_i32, %c0_i32_0 : i32, i32
  }
  func.func @transform_5(%arg0: i32) -> (i32, i32, i32) {
    %c0_i32 = arith.constant 0 : i32
    %c0_i32_0 = arith.constant 0 : i32
    %c0_i32_1 = arith.constant 0 : i32
    return %arg0, %c0_i32, %c0_i32_0 : i32, i32, i32
  }
}

</mosaic_0001>

<bundles_post_ra>
// kernel: tpu_custom_call.1
= control target key start
LH: loop header
LB: loop body
LE: loop exit
PB: predicated region body
PF: predicated region fallthrough
CT: control target
= control target key end

     0   :  { %10 = vsyncpa [#allocation3], 0  ;;  %s4126_s0 = inlined_call_operand.hbm [shape: f32[2,8,32], index: 0, kind: input, shape index: {}]   ;;  %s4127_s1 = inlined_call_operand.vmem [shape: f32[2,16,32], index: 1, kind: input, shape index: {}]   ;;  %s4128_s2 = inlined_call_operand.vmem [shape: f32[32,512], index: 2, kind: input, shape index: {}]   ;;  %s4129_s3 = inlined_call_operand.vmem [shape: f32[128,32], index: 3, kind: input, shape index: {}]   ;;  %s4130_s4 = inlined_call_operand.hbm [shape: f32[16,128], index: 4, kind: input, shape index: {}]   ;;  %s4131_s5 = inlined_call_operand.hbm [shape: f32[2,8,32], index: 5, kind: output, shape index: {}]  }
   0x1   :  { %11 = vsyncpa [#allocation6], 0 }
   0x2   :  { %12 = vsyncpa [#allocation4], 0  ;;  %s3561_s18 = smov [#allocation2]   ;;  %s3489_s22 = scalar_lea.hbm %s4126_s0, 256 }
   0x3   :  { %s18_s19 = sshll.u32 %s3561_s18, 4  ;;  %p3490_p0 = scmp.ne.s32.totalorder %s4126_s0, %s3489_s22  ;;  %s19_s19 = int_to_ptr.vmem [resolvable:$true] %s18_s19 }
   0x4   :  { %p3493_p1 = scmp.lt.u32.totalorder %s3489_s22, %s4126_s0 }
   0x6   :  { %p3495_p2 = pnand %p3493_p1, %p3490_p0 }
   0x8   :  { %3498 = shalt.err (!%p3495_p2)
}
   0x9   :  { %s3499_s27 = scalar_lea.vmem %s19_s19, 256  ;;  %p3504_p4 = scmp.lt.s32.totalorder %s19_s19, %s19_s19 }
   0xa   :  { %p3500_p3 = scmp.ne.s32.totalorder %s19_s19, %s3499_s27  ;;  %p3505_p5 = scmp.lt.s32.totalorder %s3499_s27, %s3499_s27 }
   0xc   :  { %p3506_p6 = por %p3505_p5, %p3504_p4 }
   0xe   :  { %p3507_p7 = pnand %p3506_p6, %p3500_p3 }
  0x10   :  { %3510 = shalt.err (!%p3507_p7)
}
  0x11   :  { %s3562_s28 = smov 128   ;;  %s3563_s29 = smov 8  }
  0x12   :  { %24 = dma.hbm_to_vmem [thread:$0]  %s4126_s0, 256, %s19_s19, [#allocation3], %s3562_s28, %s3562_s28, %s3563_s29  }
  0x13   :  { %s3564_s7 = smov [#allocation5]   ;;  %s3511_s11 = scalar_lea.hbm %s4130_s4, 256 }
  0x14   :  { %s36_s8 = sshll.u32 %s3564_s7, 4  ;;  %p3512_p8 = scmp.ne.s32.totalorder %s4130_s4, %s3511_s11  ;;  %s37_s8 = int_to_ptr.vmem [resolvable:$true] %s36_s8 }
  0x15   :  { %p3515_p9 = scmp.lt.u32.totalorder %s3511_s11, %s4130_s4 }
  0x17   :  { %p3517_p10 = pnand %p3515_p9, %p3512_p8 }
  0x19   :  { %3520 = shalt.err (!%p3517_p10)
}
  0x1a   :  { %s3521_s16 = scalar_lea.vmem %s37_s8, 256  ;;  %p3526_p12 = scmp.lt.s32.totalorder %s37_s8, %s37_s8 }
  0x1b   :  { %p3522_p11 = scmp.ne.s32.totalorder %s37_s8, %s3521_s16  ;;  %p3527_p13 = scmp.lt.s32.totalorder %s3521_s16, %s3521_s16 }
  0x1d   :  { %p3528_p0 = por %p3527_p13, %p3526_p12 }
  0x1f   :  { %p3529_p1 = pnand %p3528_p0, %p3522_p11 }
  0x21   :  { %3532 = shalt.err (!%p3529_p1)
}
  0x22   :  { %42 = dma.hbm_to_vmem [thread:$0]  %s4130_s4, 256, %s37_s8, [#allocation6], %s3562_s28, %s3562_s28, %s3563_s29  }
  0x23   :  { %3555 = dma.done.wait [#allocation3], 256  }
  0x24   :  { %3556 = vsyncadd [#allocation3], 4294967040 }
  0x25   :  { %3557 = dma.done.wait [#allocation6], 256  }
  0x26   :  { %3558 = vsyncadd [#allocation6], 4294967040  ;;  %vm64_vm0 = vcmask 261120   ;;  %v3638_v0 = vld [vmem:[%s4128_s2 + $0x18] sm:$0xff]  ;;  %v3657_v5 = vld [vmem:[#allocation2] sm:$0xff]  ;;  %vm262_vm1 = vcmask 64512   ;;  %v228_v47 = vlaneseq }
  0x27   :  { %v3643_v1 = vld [vmem:[%s4128_s2 + $0x38] sm:$0xff]  ;;  %2829 = vmatprep.mubr.msk.f32.mxu0 %vm64_vm0, %v3657_v5  ;;  %2840 = vmatprep.mubr.msk.f32.mxu1 %vm64_vm0, %v3657_v5  ;;  %v3665_v7 = vld [vmem:[#allocation2 + $0x8] sm:$0xff]  ;;  %v146_v8 = vld [vmem:[%s4128_s2] sm:$0xff]  ;;  %s3565_s10 = smov 120   ;;  %s3566_s11 = smov 88   ;;  %vm350_vm6 = vcmask 130048  }
  0x28   :  { %v3648_v2 = vld [vmem:[%s4128_s2 + $0x58] sm:$0xff]  ;;  %v3072_v3 = vpack.c.bf16 %v3643_v1, %v3638_v0  ;;  %v147_v9 = vld [vmem:[%s4128_s2 + $0x20] sm:$0xff]  ;;  %v2598_v14 = vld [vmem:[#allocation5] ss:$0 sm:$0xff]  ;;  %s3567_s12 = smov 96   ;;  %s3568_s13 = smov 72  }
  0x29   :  { %v3655_v4 = vld [vmem:[%s4128_s2 + $0x78] sm:$0xff]  ;;  %v148_v10 = vld [vmem:[%s4128_s2 + $0x40] sm:$0xff]  ;;  %v3080_v11 = vpack.c.bf16 %v147_v9, %v146_v8  ;;  %s3569_s14 = smov 80   ;;  %s3570_s15 = smov 112   ;;  %vm3694_vm2 = vmpackc.low %vm262_vm1, %vm262_vm1  ;;  %v3724_v48 = vand.u32 127, %v228_v47 }
  0x2a   :  { %v3076_v6 = vpack.c.bf16 %v3655_v4, %v3648_v2  ;;  %3073 = vmatprep.subr.bf16.mxu0 %v3072_v3  ;;  %v149_v12 = vld [vmem:[%s4128_s2 + $0x60] sm:$0xff]  ;;  %s3571_s16 = smov 104   ;;  %s3572_s0 = smov 64  }
  0x2b   :  { %3075 = vmatpush3.bf16.msra.mxu0 %v3072_v3  ;;  %v3084_v13 = vpack.c.bf16 %v149_v12, %v148_v10  ;;  %3081 = vmatprep.subr.bf16.mxu1 %v3080_v11  ;;  %vm248_vm3 = vcmp.ge.s32.totalorder %v3724_v48, 8  ;;  %vm251_vm4 = vcmp.lt.s32.totalorder %v3724_v48, 16  ;;  %vm239_vm7 = vcmp.lt.s32.totalorder %v3724_v48, 8  ;;  %s3573_s17 = smov 32  }
  0x2c   :  { %3077 = vmatprep.subr.bf16.mxu0 %v3076_v6  ;;  %3083 = vmatpush3.bf16.msra.mxu1 %v3080_v11  ;;  %vm3730_vm5 = vmand %vm248_vm3, %vm251_vm4  ;;  %vm1429_vm8 = vcmp.ge.s32.totalorder %v3724_v48, 16  ;;  %vm1432_vm9 = vcmp.lt.s32.totalorder %v3724_v48, 32 }
  0x2d   :  { %3085 = vmatprep.subr.bf16.mxu1 %v3084_v13  ;;  %vm3935_vm10 = vmand %vm1429_vm8, %vm1432_vm9 }
  0x2f   :  { %3079 = vmatpush3.bf16.msra.mxu0 %v3076_v6 }
  0x30   :  { %3087 = vmatpush3.bf16.msra.mxu1 %v3084_v13 }
  0x32   :  { %2830 = vmatmul.mubr.msk.f32.vlgmr.msra.gmra.mrb[0].mxu0 %vm64_vm0, %v3665_v7 }
  0x33   :  { %2841 = vmatmul.mubr.msk.f32.vlgmr.msra.gmra.mrb[0].mxu1 %vm64_vm0, %v3665_v7 }
 0x105   :  { %v2831_v15 = vpop.f32.mrb[0].mxu0 }
 0x106   :  { %v143_v16 = vadd.f32 %v2831_v15, %v2598_v14  ;;  %v137_v17 = vpop.f32.mrb[1].mxu0  ;;  %v2842_v20 = vpop.f32.mrb[0].mxu1 }
 0x107   :  { %v138_v18 = vadd.f32 %v2598_v14, %v137_v17  ;;  %v216_v21 = vpop.f32.mrb[1].mxu1 }
 0x108   :  { %v3720_v45 = vpack.i.bf16 %v2842_v20, %v216_v21  ;;  %v3722_v46 = vpack.c.bf16 %v2842_v20, %v216_v21 }
 0x109   :  { %373 = vrot.lane.b32.xlu1 %v138_v18, %s3565_s10  ;;  %2847 = vmatprep.mubr.msk.f32.mxu0 %vm262_vm1, %v138_v18  ;;  %v3298_v19 = vpack.i.bf16 %v143_v16, %v138_v18 }
 0x10b   :  { %3299 = vrot.lane.b32.xlu0 %v3298_v19, %s3566_s11 }
 0x10d   :  { %375 = vrot.lane.b32.xlu1 %v143_v16, %s3565_s10 }
 0x10f   :  { %3304 = vrot.lane.b32.xlu0 %v3298_v19, %s3567_s12 }
 0x111   :  { %3314 = vrot.lane.b32.xlu1 %v3298_v19, %s3568_s13 }
 0x113   :  { %3309 = vrot.lane.b32.xlu0 %v3298_v19, %s3569_s14 }
 0x115   :  { %662 = vrot.lane.b32.xlu1 %v143_v16, %s3570_s15 }
 0x117   :  { %660 = vrot.lane.b32.xlu0 %v138_v18, %s3570_s15 }
 0x119   :  { %868 = vrot.lane.b32.xlu1 %v143_v16, %s3571_s16 }
 0x11b   :  { %866 = vrot.lane.b32.xlu0 %v138_v18, %s3571_s16 }
 0x17b   :  { %v374_v22 = vpop.permute.xlu1 %373 }
 0x17c   :  { %2854 = vmatprep.mubr.msk.f32.mxu1 %vm262_vm1, %v374_v22 }
 0x17d   :  { %v3300_v23 = vpop.permute.xlu0 %3299 }
 0x17e   :  { %v3302_v24 = vunpack.i.h.bf16 %v3300_v23  ;;  %v3301_v25 = vunpack.i.l.bf16 %v3300_v23 }
 0x17f   :  { %v376_v26 = vpop.permute.xlu1 %375 }
 0x180   :  { %v3094_v28 = vpack.c.bf16 %v3302_v24, %v3301_v25 }
 0x181   :  { %v3305_v29 = vpop.permute.xlu0 %3304 }
 0x182   :  { %v3307_v30 = vunpack.i.h.bf16 %v3305_v29  ;;  %v3306_v31 = vunpack.i.l.bf16 %v3305_v29  ;;  %3096 = vmatprep.subr.msk.bf16.mxu1 %vm3694_vm2, %v3094_v28 }
 0x183   :  { %v3315_v32 = vpop.permute.xlu1 %3314  ;;  %3099 = vmatpush3.bf16.xpose.msk.msra.mxu1 %vm3694_vm2, %v3094_v28 }
 0x184   :  { %v3088_v33 = vpack.c.bf16 %v3307_v30, %v3306_v31  ;;  %v3317_v35 = vunpack.i.h.bf16 %v3315_v32  ;;  %v3316_v36 = vunpack.i.l.bf16 %v3315_v32 }
 0x185   :  { %v3310_v34 = vpop.permute.xlu0 %3309 }
 0x186   :  { %v3312_v37 = vunpack.i.h.bf16 %v3310_v34  ;;  %v3311_v38 = vunpack.i.l.bf16 %v3310_v34  ;;  %3090 = vmatprep.subr.msk.bf16.mxu0 %vm3694_vm2, %v3088_v33  ;;  %v3118_v41 = vpack.c.bf16 %v3317_v35, %v3316_v36 }
 0x187   :  { %3093 = vmatpush3.bf16.xpose.msk.msra.mxu0 %vm3694_vm2, %v3088_v33  ;;  %v663_v42 = vpop.permute.xlu1 %662 }
 0x188   :  { %v3108_v39 = vpack.c.bf16 %v3312_v37, %v3311_v38 }
 0x189   :  { %v661_v40 = vpop.permute.xlu0 %660 }
 0x18a   :  { %2855 = vmatmul.mubr.msk.f32.vlgmr.msra.gmra.mrb[2].mxu1 %vm262_vm1, %v376_v26  ;;  %3110 = vmatprep.subr.msk.bf16.mxu1 %vm3694_vm2, %v3108_v39 }
 0x18b   :  { %3113 = vmatpush3.bf16.xpose.msk.msra.mxu1 %vm3694_vm2, %v3108_v39  ;;  %2875 = vmatprep.mubr.msk.f32.mxu1 %vm262_vm1, %v661_v40  ;;  %v869_v44 = vpop.permute.xlu1 %868 }
 0x18c   :  { %3120 = vmatprep.subr.msk.bf16.mxu1 %vm3694_vm2, %v3118_v41 }
 0x18d   :  { %v867_v43 = vpop.permute.xlu0 %866 }
 0x18e   :  { %2848 = vmatmul.mubr.msk.f32.vlgmr.msra.gmra.mrb[2].mxu0 %vm262_vm1, %v143_v16 }
 0x192   :  { %2876 = vmatmul.mubr.msk.f32.vlgmr.msra.gmra.mrb[4].mxu1 %vm262_vm1, %v663_v42 }
 0x193   :  { %3123 = vmatpush3.bf16.xpose.msk.msra.mxu1 %vm3694_vm2, %v3118_v41  ;;  %2889 = vmatprep.mubr.msk.f32.mxu1 %vm262_vm1, %v867_v43 }
 0x19a   :  { %2890 = vmatmul.mubr.msk.f32.vlgmr.msra.gmra.mrb[6].mxu1 %vm262_vm1, %v869_v44 }
 0x25d   :  { %v2856_v49 = vpop.f32.mrb[2].mxu1 }
 0x25e   :  { %v465_v51 = vmul.f32 0.35355338, %v2856_v49  ;;  %v455_v52 = vpop.f32.mrb[3].mxu1 }
 0x25f   :  { %v464_v53 = vmul.f32 0.35355338, %v455_v52 }
 0x260   :  { %v467_v54 = vsel %vm3730_vm5, %v465_v51, -1e+30 }
 0x261   :  { %v2849_v55 = vpop.f32.mrb[2].mxu0  ;;  %v471_v56 = vsel %vm350_vm6, %v467_v54, -inf  ;;  %v466_v57 = vsel %vm239_vm7, %v464_v53, -1e+30 }
 0x262   :  { %472 = vmax.xlane.f32.xlu1 %v471_v56  ;;  %v337_v58 = vpop.f32.mrb[3].mxu0  ;;  %v468_v59 = vsel %vm350_vm6, %v466_v57, -inf  ;;  %v347_v60 = vmul.f32 0.35355338, %v2849_v55 }
 0x263   :  { %v346_v61 = vmul.f32 0.35355338, %v337_v58  ;;  %469 = vmax.xlane.f32.xlu0 %v468_v59 }
 0x264   :  { %v349_v10 = vsel %vm3730_vm5, %v347_v60, -1e+30 }
 0x265   :  { %v2877_v62 = vpop.f32.mrb[4].mxu1  ;;  %v3743_v63 = vsel %vm239_vm7, %v346_v61, -1e+30  ;;  %v354_v13 = vsel %vm350_vm6, %v349_v10, -inf }
 0x266   :  { %v742_v3 = vpop.f32.mrb[5].mxu1  ;;  %v351_v6 = vsel %vm350_vm6, %v3743_v63, -inf  ;;  %v752_v8 = vmul.f32 0.35355338, %v2877_v62 }
 0x267   :  { %v751_v9 = vmul.f32 0.35355338, %v742_v3  ;;  %352 = vmax.xlane.f32.xlu0 %v351_v6 }
 0x268   :  { %v754_v14 = vsel %vm3730_vm5, %v752_v8, -1e+30 }
 0x269   :  { %v3751_v11 = vsel %vm239_vm7, %v751_v9, -1e+30  ;;  %v758_v18 = vsel %vm350_vm6, %v754_v14, -inf }
 0x26a   :  { %v755_v12 = vsel %vm350_vm6, %v3751_v11, -inf }
 0x26b   :  { %756 = vmax.xlane.f32.xlu1 %v755_v12  ;;  %355 = vmax.xlane.f32.xlu0 %v354_v13 }
 0x26d   :  { %v2891_v15 = vpop.f32.mrb[6].mxu1 }
 0x26e   :  { %v958_v16 = vmul.f32 0.35355338, %v2891_v15  ;;  %v948_v17 = vpop.f32.mrb[7].mxu1 }
 0x26f   :  { %v957_v19 = vmul.f32 0.35355338, %v948_v17  ;;  %759 = vmax.xlane.f32.xlu0 %v758_v18 }
 0x270   :  { %v960_v20 = vsel %vm3730_vm5, %v958_v16, -1e+30 }
 0x271   :  { %v959_v21 = vsel %vm239_vm7, %v957_v19, -1e+30  ;;  %v964_v22 = vsel %vm350_vm6, %v960_v20, -inf }
 0x272   :  { %v961_v23 = vsel %vm350_vm6, %v959_v21, -inf }
 0x273   :  { %962 = vmax.xlane.f32.xlu1 %v961_v23  ;;  %965 = vmax.xlane.f32.xlu0 %v964_v22 }
 0x2ef   :  { %v473_v24 = vpop.xlane.xlu1 %472 }
 0x2f0   :  { %v475_v25 = vsub.f32 %v467_v54, %v473_v24  ;;  %v470_v26 = vpop.xlane.xlu0 %469 }
 0x2f1   :  { %v474_v28 = vsub.f32 %v466_v57, %v470_v26 }
 0x2f2   :  { %v478_v29 = vmul.f32 1.442695, %v475_v25 }
 0x2f3   :  { %v476_v30 = vmul.f32 1.442695, %v474_v28 }
 0x2f4   :  { %3413 = vpow2.f32 %v478_v29  ;;  %v353_v31 = vpop.xlane.xlu0 %352 }
 0x2f5   :  { %3415 = vpow2.f32 %v476_v30  ;;  %v357_v60 = vsub.f32 %v3743_v63, %v353_v31 }
 0x2f7   :  { %v359_v61 = vmul.f32 1.442695, %v357_v60 }
 0x2f8   :  { %v356_v32 = vpop.xlane.xlu0 %355  ;;  %v757_v35 = vpop.xlane.xlu1 %756 }
 0x2f9   :  { %v358_v33 = vsub.f32 %v349_v10, %v356_v32  ;;  %v761_v62 = vsub.f32 %v3751_v11, %v757_v35 }
 0x2fb   :  { %v361_v34 = vmul.f32 1.442695, %v358_v33  ;;  %v763_v3 = vmul.f32 1.442695, %v761_v62 }
 0x2fc   :  { %v760_v36 = vpop.xlane.xlu0 %759 }
 0x2fd   :  { %v762_v37 = vsub.f32 %v754_v14, %v760_v36  ;;  %3417 = vpow2.f32 %v361_v34 }
 0x2fe   :  { %v3414_v38 = vpop.eup %3413 }
 0x2ff   :  { %v3416_v39 = vpop.eup %3415  ;;  %v765_v40 = vmul.f32 1.442695, %v762_v37  ;;  %v483_v41 = vsel %vm350_vm6, %v3414_v38, 0.0 }
 0x300   :  { %v963_v42 = vpop.xlane.xlu1 %962  ;;  %484 = vadd.xlane.f32.xlu0 %v483_v41  ;;  %v966_v43 = vpop.xlane.xlu0 %965  ;;  %v480_v44 = vsel %vm350_vm6, %v3416_v39, 0.0 }
 0x301   :  { %3419 = vpow2.f32 %v765_v40  ;;  %v967_v47 = vsub.f32 %v959_v21, %v963_v42  ;;  %v968_v49 = vsub.f32 %v960_v20, %v966_v43  ;;  %481 = vadd.xlane.f32.xlu1 %v480_v44 }
 0x303   :  { %v971_v50 = vmul.f32 1.442695, %v968_v49  ;;  %v969_v51 = vmul.f32 1.442695, %v967_v47  ;;  %v2627_v47 = vld [vmem:[#allocation5 + $0x1] ss:$0 sm:$0xff] }
 0x305   :  { %3421 = vpow2.f32 %v971_v50 }
 0x306   :  { %3423 = vpow2.f32 %v969_v51 }
 0x307   :  { %v3767_v52 = vpop.eup %3417  ;;  %3425 = vpow2.f32 %v359_v61 }
 0x308   :  { %v366_v53 = vsel %vm350_vm6, %v3767_v52, 0.0  ;;  %3427 = vpow2.f32 %v763_v3 }
 0x309   :  { %367 = vadd.xlane.f32.xlu0 %v366_v53 }
 0x30b   :  { %v3771_v54 = vpop.eup %3419 }
 0x30c   :  { %v770_v55 = vsel %vm350_vm6, %v3771_v54, 0.0 }
 0x30d   :  { %771 = vadd.xlane.f32.xlu0 %v770_v55 }
 0x30f   :  { %v3775_v56 = vpop.eup %3421 }
 0x310   :  { %v976_v57 = vsel %vm350_vm6, %v3775_v56, 0.0  ;;  %v3779_v58 = vpop.eup %3423 }
 0x311   :  { %977 = vadd.xlane.f32.xlu0 %v976_v57  ;;  %v973_v59 = vsel %vm350_vm6, %v3779_v58, 0.0  ;;  %v3426_v6 = vpop.eup %3425 }
 0x312   :  { %3319 = vrot.lane.b32.xlu1 %v3720_v45, %s3567_s12  ;;  %v363_v8 = vsel %vm350_vm6, %v3426_v6, 0.0  ;;  %v3428_v9 = vpop.eup %3427 }
 0x313   :  { %v767_v10 = vsel %vm350_vm6, %v3428_v9, 0.0 }
 0x315   :  { %974 = vadd.xlane.f32.xlu0 %v973_v59 }
 0x32b   :  { %3324 = vrot.lane.b32.xlu0 %v3720_v45, %s3572_s0 }
 0x336   :  { %364 = vadd.xlane.f32.xlu1 %v363_v8 }
 0x33a   :  { %768 = vadd.xlane.f32.xlu1 %v767_v10 }
 0x34b   :  { %3329 = vrot.lane.b32.xlu1 %v3720_v45, %s3573_s17 }
 0x38d   :  { %v485_v63 = vpop.xlane.xlu0 %484 }
 0x38e   :  { %3429 = vrcp.f32 %v485_v63  ;;  %v482_v11 = vpop.xlane.xlu1 %481 }
 0x38f   :  { %3431 = vrcp.f32 %v482_v11 }
 0x392   :  { %v3320_v12 = vpop.permute.xlu1 %3319 }
 0x393   :  { %v3322_v13 = vunpack.i.h.bf16 %v3320_v12  ;;  %v3321_v14 = vunpack.i.l.bf16 %v3320_v12 }
 0x395   :  { %v3100_v15 = vpack.c.bf16 %v3322_v13, %v3321_v14  ;;  %v51_v13 = vld [vmem:[%s4127_s1] sm:$0xff]  ;;  %v3827_v14 = vld [vmem:[%s4127_s1 + $0x8] sm:$0xff] }
 0x396   :  { %v368_v16 = vpop.xlane.xlu0 %367  ;;  %2918 = vmatprep.mubr.msk.f32.mxu1 %vm64_vm0, %v51_v13 }
 0x397   :  { %3101 = vmatprep.subr.bf16.mxu0 %v3100_v15  ;;  %3433 = vrcp.f32 %v368_v16  ;;  %v3842_v16 = vld [vmem:[%s4127_s1 + $0x18] sm:$0xff] }
 0x398   :  { %v3430_v17 = vpop.eup %3429  ;;  %3103 = vmatpush3.bf16.msra.mxu0 %v3100_v15  ;;  %v3835_v15 = vld [vmem:[%s4127_s1 + $0x10] sm:$0xff] }
 0x399   :  { %v3432_v18 = vpop.eup %3431  ;;  %3105 = vmatprep.subr.bf16.mxu0 %v3722_v46  ;;  %v489_v20 = vmul.f32 %v3430_v17, %v3414_v38 }
 0x39a   :  { %v488_v19 = vmul.f32 %v3432_v18, %v3416_v39  ;;  %v772_v21 = vpop.xlane.xlu0 %771 }
 0x39c   :  { %2861 = vmatprep.mubr.msk.f32.mxu0 %vm350_vm6, %v488_v19 }
 0x39d   :  { %2862 = vmatmul.mubr.msk.f32.vlgmr.msra.gmra.mrb[4].mxu0 %vm350_vm6, %v489_v20 }
 0x39e   :  { %3107 = vmatpush3.bf16.msra.mxu0 %v3722_v46  ;;  %v978_v45 = vpop.xlane.xlu0 %977 }
 0x3a1   :  { %v3434_v31 = vpop.eup %3433 }
 0x3a2   :  { %v975_v22 = vpop.xlane.xlu0 %974  ;;  %v372_v35 = vmul.f32 %v3434_v31, %v3767_v52 }
 0x3a6   :  { %v3325_v23 = vpop.permute.xlu0 %3324 }
 0x3a7   :  { %v3327_v24 = vunpack.i.h.bf16 %v3325_v23  ;;  %v3326_v25 = vunpack.i.l.bf16 %v3325_v23 }
 0x3a9   :  { %v3114_v26 = vpack.c.bf16 %v3327_v24, %v3326_v25 }
 0x3ab   :  { %3115 = vmatprep.subr.bf16.mxu0 %v3114_v26 }
 0x3c3   :  { %v365_v28 = vpop.xlane.xlu1 %364 }
 0x3c4   :  { %3435 = vrcp.f32 %v365_v28 }
 0x3c7   :  { %v769_v29 = vpop.xlane.xlu1 %768 }
 0x3c8   :  { %3437 = vrcp.f32 %v769_v29 }
 0x3c9   :  { %3439 = vrcp.f32 %v772_v21 }
 0x3ca   :  { %3441 = vrcp.f32 %v975_v22 }
 0x3cb   :  { %v3330_v30 = vpop.permute.xlu1 %3329  ;;  %3443 = vrcp.f32 %v978_v45 }
 0x3cc   :  { %v3332_v33 = vunpack.i.h.bf16 %v3330_v30  ;;  %v3331_v34 = vunpack.i.l.bf16 %v3330_v30 }
 0x3ce   :  { %v3436_v32 = vpop.eup %3435  ;;  %v3124_v37 = vpack.c.bf16 %v3332_v33, %v3331_v34  ;;  %v2628_v33 = vld [vmem:[#allocation5 + $0x7] ss:$0 sm:$0xff] }
 0x3cf   :  { %v371_v46 = vmul.f32 %v3436_v32, %v3426_v6 }
 0x3d1   :  { %2868 = vmatprep.mubr.msk.f32.mxu0 %vm350_vm6, %v371_v46 }
 0x3d2   :  { %v3438_v36 = vpop.eup %3437  ;;  %2869 = vmatmul.mubr.msk.f32.vlgmr.msra.gmra.mrb[4].mxu0 %vm350_vm6, %v372_v35 }
 0x3d3   :  { %3117 = vmatpush3.bf16.msra.mxu0 %v3114_v26  ;;  %v775_v38 = vmul.f32 %v3438_v36, %v3428_v9  ;;  %v3440_v39 = vpop.eup %3439  ;;  %v2629_v36 = vld [vmem:[#allocation5 + $0x8] ss:$0 sm:$0xff] }
 0x3d4   :  { %3125 = vmatprep.subr.bf16.mxu0 %v3124_v37  ;;  %v3442_v40 = vpop.eup %3441  ;;  %v776_v41 = vmul.f32 %v3440_v39, %v3771_v54 }
 0x3d5   :  { %2882 = vmatprep.mubr.msk.f32.mxu0 %vm350_vm6, %v775_v38  ;;  %v981_v42 = vmul.f32 %v3442_v40, %v3779_v58  ;;  %v3444_v43 = vpop.eup %3443  ;;  %v3333_v58 = vpack.i.bf16 %v3643_v1, %v3638_v0  ;;  %v2633_v40 = vld [vmem:[#allocation5 + $0x3] ss:$0 sm:$0xff] }
 0x3d6   :  { %v982_v44 = vmul.f32 %v3444_v43, %v3775_v56  ;;  %v3338_v56 = vpack.i.bf16 %v3655_v4, %v3648_v2 }
 0x3da   :  { %2883 = vmatmul.mubr.msk.f32.vlgmr.msra.gmra.mrb[4].mxu0 %vm350_vm6, %v776_v41 }
 0x3db   :  { %3127 = vmatpush3.bf16.msra.mxu0 %v3124_v37  ;;  %2896 = vmatprep.mubr.msk.f32.mxu0 %vm350_vm6, %v981_v42 }
 0x3e2   :  { %2897 = vmatmul.mubr.msk.f32.vlgmr.msra.gmra.mrb[4].mxu0 %vm350_vm6, %v982_v44 }
 0x4b5   :  { %v2898_v49 = vpop.f32.mrb[4].mxu0 }
 0x4b6   :  { %v1078_v50 = vadd.f32 %v2898_v49, %v2627_v47  ;;  %v1061_v51 = vpop.f32.mrb[5].mxu0 }
 0x4b7   :  { %v1077_v52 = vadd.f32 %v2627_v47, %v1061_v51 }
 0x4b8   :  { %v1080_v53 = vadd.f32 %v1078_v50, %v3665_v7 }
 0x4b9   :  { %v1079_v54 = vadd.f32 %v1077_v52, %v3657_v5 }
 0x4ba   :  { %v1086_v55 = vsel %vm64_vm0, %v1080_v53, 0.0 }
 0x4bb   :  { %1087 = vadd.xlane.f32.xlu0 %v1086_v55  ;;  %v1083_v57 = vsel %vm64_vm0, %v1079_v54, 0.0 }
 0x4bc   :  { %1084 = vadd.xlane.f32.xlu1 %v1083_v57  ;;  %v1338_v57 = vld [vmem:[%s4128_s2 + $0x8] sm:$0xff] }
 0x4cd   :  { %3339 = vrot.lane.b32.xlu1 %v3338_v56, %s3573_s17 }
 0x4d1   :  { %3334 = vrot.lane.b32.xlu0 %v3333_v58, %s3573_s17 }
 0x4d5   :  { %3349 = vrot.lane.b32.xlu0 %v3338_v56, %s3572_s0  ;;  %v1339_v56 = vld [vmem:[%s4128_s2 + $0x28] sm:$0xff] }
 0x548   :  { %v1088_v7 = vpop.xlane.xlu0 %1087 }
 0x549   :  { %v1091_v5 = vmul.f32 0.03125, %v1088_v7  ;;  %v1085_v59 = vpop.xlane.xlu1 %1084  ;;  %v3144_v7 = vpack.c.bf16 %v1339_v56, %v1338_v57 }
 0x54a   :  { %v1090_v60 = vmul.f32 0.03125, %v1085_v59 }
 0x54b   :  { %v1093_v61 = vsub.f32 %v1080_v53, %v1091_v5  ;;  %v1341_v5 = vld [vmem:[%s4128_s2 + $0x68] sm:$0xff] }
 0x54c   :  { %v1092_v62 = vsub.f32 %v1079_v54, %v1090_v60  ;;  %v3335_v3 = vpop.permute.xlu0 %3334 }
 0x54d   :  { %v1095_v6 = vmul.f32 %v1093_v61, %v1093_v61  ;;  %v3337_v8 = vunpack.i.h.bf16 %v3335_v3  ;;  %v3336_v9 = vunpack.i.l.bf16 %v3335_v3  ;;  %v3340_v2 = vpop.permute.xlu1 %3339 }
 0x54e   :  { %v3342_v4 = vunpack.i.h.bf16 %v3340_v2  ;;  %v3341_v10 = vunpack.i.l.bf16 %v3340_v2  ;;  %v1094_v1 = vmul.f32 %v1092_v62, %v1092_v62 }
 0x54f   :  { %v1099_v0 = vsel %vm64_vm0, %v1095_v6, 0.0  ;;  %v3136_v63 = vpack.c.bf16 %v3337_v8, %v3336_v9 }
 0x550   :  { %1100 = vadd.xlane.f32.xlu1 %v1099_v0  ;;  %v3140_v11 = vpack.c.bf16 %v3342_v4, %v3341_v10  ;;  %v1096_v12 = vsel %vm64_vm0, %v1094_v1, 0.0  ;;  %v3350_v21 = vpop.permute.xlu0 %3349 }
 0x551   :  { %3137 = vmatprep.subr.bf16.mxu1 %v3136_v63  ;;  %v3352_v23 = vunpack.i.h.bf16 %v3350_v21  ;;  %v3351_v24 = vunpack.i.l.bf16 %v3350_v21 }
 0x552   :  { %3139 = vmatpush3.bf16.msra.mxu1 %v3136_v63 }
 0x553   :  { %3141 = vmatprep.subr.bf16.mxu1 %v3140_v11  ;;  %v3132_v30 = vpack.c.bf16 %v3352_v23, %v3351_v24 }
 0x554   :  { %1097 = vadd.xlane.f32.xlu1 %v1096_v12 }
 0x556   :  { %3143 = vmatpush3.bf16.msra.mxu1 %v3140_v11  ;;  %v2630_v11 = vld [vmem:[#allocation5 + $0x2] ss:$0 sm:$0xff] }
 0x559   :  { %2919 = vmatmul.mubr.msk.f32.vlgmr.msra.gmra.mrb[8].mxu1 %vm64_vm0, %v3827_v14 }
 0x55a   :  { %2921 = vmatprep.mubr.msk.f32.mxu1 %vm64_vm0, %v3835_v15 }
 0x55d   :  { %2922 = vmatmul.mubr.msk.f32.gmra.mrb[10].mxu1 %vm64_vm0, %v3842_v16 }
 0x565   :  { %3344 = vrot.lane.b32.xlu1 %v3333_v58, %s3572_s0  ;;  %v1340_v58 = vld [vmem:[%s4128_s2 + $0x48] sm:$0xff] }
 0x566   :  { %v3148_v59 = vpack.c.bf16 %v1341_v5, %v1340_v58 }
 0x5dd   :  { %v1101_v17 = vpop.xlane.xlu1 %1100 }
 0x5de   :  { %v1103_v18 = vmul.f32 0.03125, %v1101_v17 }
 0x5e0   :  { %v1105_v19 = vadd.f32 1e-05, %v1103_v18 }
 0x5e1   :  { %v1098_v20 = vpop.xlane.xlu1 %1097 }
 0x5e2   :  { %3445 = vrsqrt.f32 %v1105_v19  ;;  %v1102_v45 = vmul.f32 0.03125, %v1098_v20 }
 0x5e4   :  { %v1104_v22 = vadd.f32 1e-05, %v1102_v45 }
 0x5e5   :  { %v3345_v25 = vpop.permute.xlu1 %3344 }
 0x5e6   :  { %3447 = vrsqrt.f32 %v1104_v22  ;;  %v3347_v26 = vunpack.i.h.bf16 %v3345_v25  ;;  %v3346_v28 = vunpack.i.l.bf16 %v3345_v25 }
 0x5e8   :  { %v3128_v29 = vpack.c.bf16 %v3347_v26, %v3346_v28 }
 0x5ea   :  { %3129 = vmatprep.subr.bf16.mxu0 %v3128_v29 }
 0x5eb   :  { %3131 = vmatpush3.bf16.msra.mxu0 %v3128_v29 }
 0x5ec   :  { %v3446_v31 = vpop.eup %3445  ;;  %3133 = vmatprep.subr.bf16.mxu0 %v3132_v30 }
 0x5ed   :  { %v1109_v32 = vmul.f32 %v3446_v31, %v1093_v61 }
 0x5ef   :  { %3135 = vmatpush3.bf16.msra.mxu0 %v3132_v30  ;;  %v1115_v35 = vmul.f32 %v2628_v33, %v1109_v32 }
 0x5f0   :  { %v3448_v34 = vpop.eup %3447  ;;  %3145 = vmatprep.subr.bf16.mxu0 %v3144_v7 }
 0x5f1   :  { %v1108_v46 = vmul.f32 %v3448_v34, %v1092_v62  ;;  %v3848_v39 = vadd.f32 %v2629_v36, %v1115_v35 }
 0x5f3   :  { %v1114_v37 = vmul.f32 %v2628_v33, %v1108_v46 }
 0x5f5   :  { %v3846_v38 = vadd.f32 %v2629_v36, %v1114_v37 }
 0x5f7   :  { %2907 = vmatprep.mubr.msk.f32.mxu0 %vm64_vm0, %v3846_v38 }
 0x5f8   :  { %2908 = vmatmul.mubr.msk.f32.vlgmr.msra.gmra.mrb[6].mxu0 %vm64_vm0, %v3848_v39 }
 0x5f9   :  { %2932 = vmatprep.mubr.msk.f32.mxu0 %vm64_vm0, %v51_v13  ;;  %3147 = vmatpush3.bf16.msra.mxu0 %v3144_v7 }
 0x5fa   :  { %3149 = vmatprep.subr.bf16.mxu0 %v3148_v59 }
 0x5fd   :  { %3151 = vmatpush3.bf16.msra.mxu0 %v3148_v59 }
 0x600   :  { %2933 = vmatmul.mubr.msk.f32.vlgmr.msra.gmra.mrb[8].mxu0 %vm64_vm0, %v3827_v14 }
 0x601   :  { %2935 = vmatprep.mubr.msk.f32.mxu0 %vm64_vm0, %v3835_v15 }
 0x604   :  { %2936 = vmatmul.mubr.msk.f32.gmra.mrb[10].mxu0 %vm64_vm0, %v3842_v16 }
 0x62c   :  { %v2920_v41 = vpop.f32.mrb[8].mxu1 }
 0x62d   :  { %v1325_v42 = vadd.f32 %v2920_v41, %v2633_v40  ;;  %v1319_v43 = vpop.f32.mrb[9].mxu1 }
 0x62e   :  { %v1320_v44 = vadd.f32 %v2633_v40, %v1319_v43 }
 0x630   :  { %v3353_v47 = vpack.i.bf16 %v1325_v42, %v1320_v44  ;;  %v3152_v49 = vpack.c.bf16 %v1325_v42, %v1320_v44  ;;  %v2923_v50 = vpop.f32.mrb[10].mxu1 }
 0x631   :  { %v1335_v51 = vadd.f32 %v2923_v50, %v2633_v40  ;;  %v1329_v52 = vpop.f32.mrb[11].mxu1 }
 0x632   :  { %3354 = vrot.lane.b32.xlu1 %v3353_v47, %s3565_s10  ;;  %3154 = vmatprep.subr.msk.bf16.mxu1 %vm3694_vm2, %v3152_v49  ;;  %v1330_v53 = vadd.f32 %v2633_v40, %v1329_v52 }
 0x633   :  { %3157 = vmatpush3.bf16.xpose.msk.msra.mxu1 %vm3694_vm2, %v3152_v49 }
 0x634   :  { %v3358_v54 = vpack.i.bf16 %v1335_v51, %v1330_v53  ;;  %v3158_v55 = vpack.c.bf16 %v1335_v51, %v1330_v53 }
 0x636   :  { %3364 = vrot.lane.b32.xlu1 %v3353_v47, %s3570_s15  ;;  %3359 = vrot.lane.b32.xlu0 %v3358_v54, %s3565_s10 }
 0x637   :  { %3160 = vmatprep.subr.msk.bf16.mxu1 %vm3694_vm2, %v3158_v55 }
 0x63a   :  { %3369 = vrot.lane.b32.xlu0 %v3358_v54, %s3570_s15 }
 0x63b   :  { %3163 = vmatpush3.bf16.xpose.msk.msra.mxu1 %vm3694_vm2, %v3158_v55 }
 0x6a4   :  { %v3355_v60 = vpop.permute.xlu1 %3354 }
 0x6a5   :  { %v3357_v61 = vunpack.i.h.bf16 %v3355_v60  ;;  %v3356_v62 = vunpack.i.l.bf16 %v3355_v60 }
 0x6a7   :  { %v3164_v3 = vpack.c.bf16 %v3357_v61, %v3356_v62 }
 0x6a8   :  { %v3365_v6 = vpop.permute.xlu1 %3364  ;;  %v3360_v4 = vpop.permute.xlu0 %3359 }
 0x6a9   :  { %v3367_v8 = vunpack.i.h.bf16 %v3365_v6  ;;  %v3366_v9 = vunpack.i.l.bf16 %v3365_v6  ;;  %3166 = vmatprep.subr.msk.bf16.mxu1 %vm3694_vm2, %v3164_v3  ;;  %v3362_v12 = vunpack.i.h.bf16 %v3360_v4  ;;  %v3361_v13 = vunpack.i.l.bf16 %v3360_v4 }
 0x6ab   :  { %v3192_v2 = vpack.c.bf16 %v3367_v8, %v3366_v9  ;;  %v3170_v18 = vpack.c.bf16 %v3362_v12, %v3361_v13 }
 0x6ac   :  { %v3370_v10 = vpop.permute.xlu0 %3369 }
 0x6ad   :  { %3194 = vmatprep.subr.msk.bf16.mxu0 %vm3694_vm2, %v3192_v2  ;;  %v3372_v0 = vunpack.i.h.bf16 %v3370_v10  ;;  %v3371_v1 = vunpack.i.l.bf16 %v3370_v10 }
 0x6ae   :  { %3197 = vmatpush3.bf16.xpose.msk.msra.mxu0 %vm3694_vm2, %v3192_v2 }
 0x6af   :  { %v3198_v63 = vpack.c.bf16 %v3372_v0, %v3371_v1 }
 0x6b1   :  { %3200 = vmatprep.subr.msk.bf16.mxu0 %vm3694_vm2, %v3198_v63 }
 0x6b6   :  { %3203 = vmatpush3.bf16.xpose.msk.msra.mxu0 %vm3694_vm2, %v3198_v63 }
 0x6cb   :  { %v2909_v14 = vpop.f32.mrb[6].mxu0 }
 0x6cc   :  { %v1221_v15 = vadd.f32 %v2909_v14, %v2630_v11  ;;  %v1215_v16 = vpop.f32.mrb[7].mxu0 }
 0x6cd   :  { %v1216_v17 = vadd.f32 %v2630_v11, %v1215_v16 }
 0x6ce   :  { %1558 = vrot.lane.b32.xlu0 %v1221_v15, %s3565_s10 }
 0x6cf   :  { %2946 = vmatprep.mubr.msk.f32.mxu1 %vm262_vm1, %v1216_v17  ;;  %1556 = vrot.lane.b32.xlu1 %v1216_v17, %s3565_s10 }
 0x6d0   :  { %2947 = vmatmul.mubr.msk.f32.vlgmr.msra.gmra.mrb[12].mxu1 %vm262_vm1, %v1221_v15 }
 0x6d1   :  { %3169 = vmatpush3.bf16.xpose.msk.msra.mxu1 %vm3694_vm2, %v3164_v3 }
 0x6d2   :  { %1859 = vrot.lane.b32.xlu0 %v1216_v17, %s3570_s15  ;;  %3172 = vmatprep.subr.msk.bf16.mxu1 %vm3694_vm2, %v3170_v18 }
 0x6d3   :  { %3374 = vrot.lane.b32.xlu1 %v3353_v47, %s3571_s16  ;;  %v2934_v19 = vpop.f32.mrb[8].mxu0 }
 0x6d4   :  { %v1408_v20 = vpop.f32.mrb[9].mxu0 }
 0x6d5   :  { %v3925_v46 = vpack.i.bf16 %v2934_v19, %v1408_v20  ;;  %v3927_v35 = vpack.c.bf16 %v2934_v19, %v1408_v20 }
 0x6d6   :  { %3379 = vrot.lane.b32.xlu0 %v3358_v54, %s3571_s16 }
 0x6d7   :  { %1861 = vrot.lane.b32.xlu1 %v1221_v15, %s3570_s15  ;;  %v2937_v36 = vpop.f32.mrb[10].mxu0 }
 0x6d8   :  { %v1418_v37 = vpop.f32.mrb[11].mxu0 }
 0x6d9   :  { %3175 = vmatpush3.bf16.xpose.msk.msra.mxu1 %vm3694_vm2, %v3170_v18  ;;  %v3929_v40 = vpack.i.bf16 %v2937_v36, %v1418_v37  ;;  %v3931_v41 = vpack.c.bf16 %v2937_v36, %v1418_v37 }
 0x6da   :  { %2081 = vrot.lane.b32.xlu0 %v1221_v15, %s3571_s16 }
 0x6db   :  { %2079 = vrot.lane.b32.xlu1 %v1216_v17, %s3571_s16 }
 0x740   :  { %v1559_v21 = vpop.permute.xlu0 %1558 }
 0x741   :  { %v1557_v45 = vpop.permute.xlu1 %1556 }
 0x742   :  { %2957 = vmatprep.mubr.msk.f32.mxu1 %vm262_vm1, %v1557_v45 }
 0x743   :  { %2958 = vmatmul.mubr.msk.f32.vlgmr.msra.gmra.mrb[14].mxu1 %vm262_vm1, %v1559_v21 }
 0x744   :  { %v1860_v22 = vpop.permute.xlu0 %1859 }
 0x745   :  { %2990 = vmatprep.mubr.msk.f32.mxu0 %vm262_vm1, %v1860_v22  ;;  %v3375_v23 = vpop.permute.xlu1 %3374 }
 0x746   :  { %v3377_v24 = vunpack.i.h.bf16 %v3375_v23  ;;  %v3376_v25 = vunpack.i.l.bf16 %v3375_v23 }
 0x748   :  { %v3212_v26 = vpack.c.bf16 %v3377_v24, %v3376_v25  ;;  %v3380_v28 = vpop.permute.xlu0 %3379 }
 0x749   :  { %v3382_v29 = vunpack.i.h.bf16 %v3380_v28  ;;  %v3381_v30 = vunpack.i.l.bf16 %v3380_v28  ;;  %v1862_v31 = vpop.permute.xlu1 %1861 }
 0x74a   :  { %2991 = vmatmul.mubr.msk.f32.vlgmr.msra.gmra.mrb[12].mxu0 %vm262_vm1, %v1862_v31  ;;  %3214 = vmatprep.subr.msk.bf16.mxu0 %vm3694_vm2, %v3212_v26 }
 0x74b   :  { %v3218_v32 = vpack.c.bf16 %v3382_v29, %v3381_v30  ;;  %3217 = vmatpush3.bf16.xpose.msk.msra.mxu0 %vm3694_vm2, %v3212_v26 }
 0x74c   :  { %v2082_v34 = vpop.permute.xlu0 %2081 }
 0x74d   :  { %v2080_v33 = vpop.permute.xlu1 %2079  ;;  %3220 = vmatprep.subr.msk.bf16.mxu0 %vm3694_vm2, %v3218_v32 }
 0x74e   :  { %3012 = vmatprep.mubr.msk.f32.mxu0 %vm262_vm1, %v2080_v33 }
 0x753   :  { %3223 = vmatpush3.bf16.xpose.msk.msra.mxu0 %vm3694_vm2, %v3218_v32 }
 0x75a   :  { %3013 = vmatmul.mubr.msk.f32.vlgmr.msra.gmra.mrb[14].mxu0 %vm262_vm1, %v2082_v34 }
 0x7a3   :  { %v2948_v42 = vpop.f32.mrb[12].mxu1 }
 0x7a4   :  { %v1531_v43 = vmul.f32 0.35355338, %v2948_v42  ;;  %v1521_v44 = vpop.f32.mrb[13].mxu1 }
 0x7a5   :  { %v1530_v47 = vmul.f32 0.35355338, %v1521_v44 }
 0x7a6   :  { %v1533_v49 = vsel %vm3935_vm10, %v1531_v43, -1e+30 }
 0x7a7   :  { %v1537_v50 = vsel %vm64_vm0, %v1533_v49, -inf  ;;  %v1532_v51 = vsel %vm251_vm4, %v1530_v47, -1e+30 }
 0x7a8   :  { %1538 = vmax.xlane.f32.xlu1 %v1537_v50  ;;  %v1534_v52 = vsel %vm64_vm0, %v1532_v51, -inf }
 0x7a9   :  { %1535 = vmax.xlane.f32.xlu0 %v1534_v52 }
 0x816   :  { %v2959_v53 = vpop.f32.mrb[14].mxu1 }
 0x817   :  { %v1656_v54 = vmul.f32 0.35355338, %v2959_v53  ;;  %v1646_v55 = vpop.f32.mrb[15].mxu1 }
 0x818   :  { %v1655_v7 = vmul.f32 0.35355338, %v1646_v55 }
 0x819   :  { %v1658_v57 = vsel %vm3935_vm10, %v1656_v54, -1e+30 }
 0x81a   :  { %v1662_v56 = vsel %vm64_vm0, %v1658_v57, -inf  ;;  %v1657_v8 = vsel %vm251_vm4, %v1655_v7, -1e+30 }
 0x81b   :  { %1663 = vmax.xlane.f32.xlu0 %v1662_v56  ;;  %v1659_v9 = vsel %vm64_vm0, %v1657_v8, -inf }
 0x81d   :  { %v2992_v58 = vpop.f32.mrb[12].mxu0 }
 0x81e   :  { %v1959_v5 = vmul.f32 0.35355338, %v2992_v58  ;;  %v1949_v59 = vpop.f32.mrb[13].mxu0 }
 0x81f   :  { %v1958_v60 = vmul.f32 0.35355338, %v1949_v59 }
 0x820   :  { %v1961_v61 = vsel %vm3935_vm10, %v1959_v5, -1e+30 }
 0x821   :  { %v1965_v62 = vsel %vm64_vm0, %v1961_v61, -inf  ;;  %v3953_v3 = vsel %vm251_vm4, %v1958_v60, -1e+30 }
 0x822   :  { %1966 = vmax.xlane.f32.xlu1 %v1965_v62  ;;  %v1962_v6 = vsel %vm64_vm0, %v3953_v3, -inf }
 0x823   :  { %1963 = vmax.xlane.f32.xlu0 %v1962_v6 }
 0x826   :  { %1660 = vmax.xlane.f32.xlu1 %v1659_v9 }
 0x82d   :  { %v3014_v2 = vpop.f32.mrb[14].mxu0 }
 0x82e   :  { %v2179_v4 = vmul.f32 0.35355338, %v3014_v2  ;;  %v2169_v10 = vpop.f32.mrb[15].mxu0 }
 0x82f   :  { %v2178_v0 = vmul.f32 0.35355338, %v2169_v10 }
 0x830   :  { %v3962_v1 = vsel %vm3935_vm10, %v2179_v4, -1e+30 }
 0x831   :  { %v2185_v63 = vsel %vm64_vm0, %v3962_v1, -inf  ;;  %v2180_v11 = vsel %vm251_vm4, %v2178_v0, -1e+30 }
 0x832   :  { %2186 = vmax.xlane.f32.xlu1 %v2185_v63  ;;  %v2182_v12 = vsel %vm64_vm0, %v2180_v11, -inf }
 0x833   :  { %2183 = vmax.xlane.f32.xlu0 %v2182_v12 }
 0x835   :  { %v1539_v13 = vpop.xlane.xlu1 %1538 }
 0x836   :  { %v1536_v14 = vpop.xlane.xlu0 %1535  ;;  %v1541_v15 = vsub.f32 %v1533_v49, %v1539_v13 }
 0x837   :  { %v1540_v16 = vsub.f32 %v1532_v51, %v1536_v14 }
 0x838   :  { %v1544_v17 = vmul.f32 1.442695, %v1541_v15 }
 0x839   :  { %v1542_v18 = vmul.f32 1.442695, %v1540_v16 }
 0x83a   :  { %3449 = vpow2.f32 %v1544_v17 }
 0x83b   :  { %3451 = vpow2.f32 %v1542_v18 }
 0x843   :  { %3389 = vrot.lane.b32.xlu1 %v3929_v40, %s3567_s12 }
 0x844   :  { %v3973_v48 = vpop.eup %3449 }
 0x845   :  { %v3975_v19 = vpop.eup %3451  ;;  %v1549_v20 = vsel %vm64_vm0, %v3973_v48, 0.0 }
 0x846   :  { %v1546_v21 = vsel %vm64_vm0, %v3975_v19, 0.0 }
 0x849   :  { %3384 = vrot.lane.b32.xlu0 %v3925_v46, %s3567_s12 }
 0x867   :  { %1550 = vadd.xlane.f32.xlu1 %v1549_v20 }
 0x868   :  { %1547 = vadd.xlane.f32.xlu0 %v1546_v21 }
 0x8a8   :  { %v1664_v45 = vpop.xlane.xlu0 %1663 }
 0x8a9   :  { %v1666_v22 = vsub.f32 %v1658_v57, %v1664_v45 }
 0x8ab   :  { %v1669_v23 = vmul.f32 1.442695, %v1666_v22 }
 0x8ad   :  { %3453 = vpow2.f32 %v1669_v23 }
 0x8af   :  { %v1967_v24 = vpop.xlane.xlu1 %1966 }
 0x8b0   :  { %v1969_v25 = vsub.f32 %v1961_v61, %v1967_v24  ;;  %v1964_v33 = vpop.xlane.xlu0 %1963 }
 0x8b1   :  { %v1968_v57 = vsub.f32 %v3953_v3, %v1964_v33 }
 0x8b2   :  { %v1972_v26 = vmul.f32 1.442695, %v1969_v25 }
 0x8b3   :  { %v1661_v28 = vpop.xlane.xlu1 %1660  ;;  %v1970_v58 = vmul.f32 1.442695, %v1968_v57 }
 0x8b4   :  { %3455 = vpow2.f32 %v1972_v26  ;;  %v1665_v29 = vsub.f32 %v1657_v8, %v1661_v28 }
 0x8b6   :  { %v1667_v30 = vmul.f32 1.442695, %v1665_v29 }
 0x8b7   :  { %v3454_v31 = vpop.eup %3453 }
 0x8b8   :  { %3457 = vpow2.f32 %v1667_v30  ;;  %v1674_v32 = vsel %vm64_vm0, %v3454_v31, 0.0 }
 0x8b9   :  { %1675 = vadd.xlane.f32.xlu1 %v1674_v32 }
 0x8be   :  { %v3982_v34 = vpop.eup %3455 }
 0x8bf   :  { %v2187_v36 = vpop.xlane.xlu1 %2186  ;;  %v1977_v37 = vsel %vm64_vm0, %v3982_v34, 0.0 }
 0x8c0   :  { %1978 = vadd.xlane.f32.xlu1 %v1977_v37  ;;  %v2184_v42 = vpop.xlane.xlu0 %2183  ;;  %v2189_v7 = vsub.f32 %v3962_v1, %v2187_v36 }
 0x8c1   :  { %v2188_v55 = vsub.f32 %v2180_v11, %v2184_v42 }
 0x8c2   :  { %v3458_v27 = vpop.eup %3457  ;;  %v2192_v5 = vmul.f32 1.442695, %v2189_v7 }
 0x8c3   :  { %v3390_v43 = vpop.permute.xlu1 %3389  ;;  %v1671_v44 = vsel %vm64_vm0, %v3458_v27, 0.0  ;;  %v2190_v56 = vmul.f32 1.442695, %v2188_v55 }
 0x8c4   :  { %1672 = vadd.xlane.f32.xlu0 %v1671_v44  ;;  %v3385_v47 = vpop.permute.xlu0 %3384  ;;  %v3392_v49 = vunpack.i.h.bf16 %v3390_v43  ;;  %v3391_v50 = vunpack.i.l.bf16 %v3390_v43  ;;  %v2674_v43 = vld [vmem:[#allocation5 + $0x4] ss:$0 sm:$0xff] }
 0x8c5   :  { %v3387_v51 = vunpack.i.h.bf16 %v3385_v47  ;;  %v3386_v52 = vunpack.i.l.bf16 %v3385_v47  ;;  %3459 = vpow2.f32 %v2190_v56 }
 0x8c6   :  { %v3180_v54 = vpack.c.bf16 %v3392_v49, %v3391_v50  ;;  %3461 = vpow2.f32 %v1970_v58 }
 0x8c7   :  { %v3176_v53 = vpack.c.bf16 %v3387_v51, %v3386_v52  ;;  %3463 = vpow2.f32 %v2192_v5 }
 0x8c9   :  { %3177 = vmatprep.subr.bf16.mxu1 %v3176_v53 }
 0x8ca   :  { %3179 = vmatpush3.bf16.msra.mxu1 %v3176_v53 }
 0x8cb   :  { %3181 = vmatprep.subr.bf16.mxu1 %v3180_v54 }
 0x8ce   :  { %3183 = vmatpush3.bf16.msra.mxu1 %v3180_v54 }
 0x8cf   :  { %3185 = vmatprep.subr.bf16.mxu1 %v3927_v35  ;;  %v3994_v59 = vpop.eup %3459 }
 0x8d0   :  { %v2194_v60 = vsel %vm64_vm0, %v3994_v59, 0.0  ;;  %v3998_v61 = vpop.eup %3461 }
 0x8d1   :  { %3399 = vrot.lane.b32.xlu1 %v3929_v40, %s3572_s0  ;;  %v1974_v62 = vsel %vm64_vm0, %v3998_v61, 0.0  ;;  %v4002_v3 = vpop.eup %3463 }
 0x8d2   :  { %v2197_v6 = vsel %vm64_vm0, %v4002_v3, 0.0 }
 0x8da   :  { %3394 = vrot.lane.b32.xlu0 %v3925_v46, %s3572_s0 }
 0x8f4   :  { %v1551_v8 = vpop.xlane.xlu1 %1550 }
 0x8f5   :  { %2195 = vadd.xlane.f32.xlu1 %v2194_v60  ;;  %v1548_v9 = vpop.xlane.xlu0 %1547  ;;  %v2348_v60 = vld [vmem:[%s4128_s2 + $0x10] sm:$0xff] }
 0x8f6   :  { %3465 = vrcp.f32 %v1548_v9  ;;  %v2440_v9 = vld [vmem:[%s4129_s3] sm:$0xff] }
 0x8f9   :  { %1975 = vadd.xlane.f32.xlu0 %v1974_v62 }
 0x8fd   :  { %2198 = vadd.xlane.f32.xlu0 %v2197_v6  ;;  %v2351_v6 = vld [vmem:[%s4128_s2 + $0x70] sm:$0xff] }
 0x900   :  { %v3466_v10 = vpop.eup %3465 }
 0x906   :  { %3404 = vrot.lane.b32.xlu1 %v3925_v46, %s3573_s17  ;;  %v1554_v46 = vmul.f32 %v3466_v10, %v3975_v19 }
 0x913   :  { %3409 = vrot.lane.b32.xlu0 %v3929_v40, %s3573_s17 }
 0x946   :  { %v1676_v2 = vpop.xlane.xlu1 %1675 }
 0x947   :  { %3467 = vrcp.f32 %v1676_v2  ;;  %v2441_v2 = vld [vmem:[%s4129_s3 + $0x8] sm:$0xff] }
 0x948   :  { %v3240_v10 = vpack.c.bf16 %v2441_v2, %v2440_v9 }
 0x94a   :  { %3241 = vmatprep.subr.bf16.mxu0 %v3240_v10 }
 0x94b   :  { %3243 = vmatpush3.bf16.msra.mxu0 %v3240_v10 }
 0x94d   :  { %v1979_v1 = vpop.xlane.xlu1 %1978 }
 0x951   :  { %v1673_v4 = vpop.xlane.xlu0 %1672  ;;  %v3468_v0 = vpop.eup %3467 }
 0x952   :  { %3469 = vrcp.f32 %v1673_v4  ;;  %v1680_v13 = vmul.f32 %v3468_v0, %v3454_v31  ;;  %v3400_v15 = vpop.permute.xlu1 %3399  ;;  %v2442_v4 = vld [vmem:[%s4129_s3 + $0x10] sm:$0xff]  ;;  %v2443_v0 = vld [vmem:[%s4129_s3 + $0x18] sm:$0xff] }
 0x953   :  { %3471 = vrcp.f32 %v1551_v8  ;;  %v3402_v17 = vunpack.i.h.bf16 %v3400_v15  ;;  %v3401_v18 = vunpack.i.l.bf16 %v3400_v15  ;;  %v2449_v15 = vld [vmem:[%s4129_s3 + $0x48] sm:$0xff] }
 0x954   :  { %3473 = vrcp.f32 %v1979_v1  ;;  %v3244_v1 = vpack.c.bf16 %v2443_v0, %v2442_v4 }
 0x955   :  { %v3395_v11 = vpop.permute.xlu0 %3394  ;;  %v3208_v19 = vpack.c.bf16 %v3402_v17, %v3401_v18  ;;  %v2450_v17 = vld [vmem:[%s4129_s3 + $0x50] sm:$0xff]  ;;  %v2451_v18 = vld [vmem:[%s4129_s3 + $0x58] sm:$0xff] }
 0x956   :  { %v3397_v40 = vunpack.i.h.bf16 %v3395_v11  ;;  %v3396_v14 = vunpack.i.l.bf16 %v3395_v11  ;;  %v2445_v11 = vld [vmem:[%s4129_s3 + $0x28] sm:$0xff]  ;;  %3245 = vmatprep.subr.bf16.mxu0 %v3244_v1 }
 0x957   :  { %3247 = vmatpush3.bf16.msra.mxu0 %v3244_v1 }
 0x958   :  { %v3204_v20 = vpack.c.bf16 %v3397_v40, %v3396_v14  ;;  %v2448_v14 = vld [vmem:[%s4129_s3 + $0x40] sm:$0xff] }
 0x95c   :  { %v3470_v63 = vpop.eup %3469 }
 0x95d   :  { %v1679_v12 = vmul.f32 %v3470_v63, %v3458_v27  ;;  %v3472_v16 = vpop.eup %3471  ;;  %v2444_v63 = vld [vmem:[%s4129_s3 + $0x20] sm:$0xff] }
 0x95e   :  { %v1555_v21 = vmul.f32 %v3472_v16, %v3973_v48  ;;  %v3474_v48 = vpop.eup %3473  ;;  %v3256_v16 = vpack.c.bf16 %v2449_v15, %v2448_v14  ;;  %v2682_v15 = vld [vmem:[#allocation5 + $0xc] ss:$0 sm:$0xff] }
 0x95f   :  { %2968 = vmatprep.mubr.msk.f32.mxu1 %vm64_vm0, %v1679_v12  ;;  %v1983_v33 = vmul.f32 %v3474_v48, %v3982_v34  ;;  %v3248_v12 = vpack.c.bf16 %v2445_v11, %v2444_v63  ;;  %v2675_v48 = vld [vmem:[#allocation5 + $0x9] ss:$0 sm:$0xff] }
 0x960   :  { %2969 = vmatmul.mubr.msk.f32.vlgmr.msra.gmra.mrb[16].mxu1 %vm64_vm0, %v1680_v13  ;;  %v2446_v13 = vld [vmem:[%s4129_s3 + $0x30] sm:$0xff] }
 0x961   :  { %3187 = vmatpush3.bf16.msra.mxu1 %v3927_v35  ;;  %2979 = vmatprep.mubr.msk.f32.mxu1 %vm64_vm0, %v1554_v46  ;;  %v2447_v46 = vld [vmem:[%s4129_s3 + $0x38] sm:$0xff] }
 0x962   :  { %3189 = vmatprep.subr.bf16.mxu1 %v3931_v41  ;;  %3249 = vmatprep.subr.bf16.mxu0 %v3248_v12  ;;  %v3252_v40 = vpack.c.bf16 %v2447_v46, %v2446_v13  ;;  %v2681_v13 = vld [vmem:[#allocation5 + $0xb] ss:$0 sm:$0xff] }
 0x963   :  { %3251 = vmatpush3.bf16.msra.mxu0 %v3248_v12 }
 0x964   :  { %3253 = vmatprep.subr.bf16.mxu0 %v3252_v40 }
 0x965   :  { %3191 = vmatpush3.bf16.msra.mxu1 %v3931_v41 }
 0x966   :  { %3205 = vmatprep.subr.bf16.mxu1 %v3204_v20 }
 0x967   :  { %3255 = vmatpush3.bf16.msra.mxu0 %v3252_v40 }
 0x968   :  { %2980 = vmatmul.mubr.msk.f32.vlgmr.msra.gmra.mrb[16].mxu1 %vm64_vm0, %v1555_v21  ;;  %3257 = vmatprep.subr.bf16.mxu0 %v3256_v16  ;;  %v2452_v21 = vld [vmem:[%s4129_s3 + $0x60] sm:$0xff] }
 0x969   :  { %3207 = vmatpush3.bf16.msra.mxu1 %v3204_v20  ;;  %v3260_v20 = vpack.c.bf16 %v2451_v18, %v2450_v17 }
 0x96a   :  { %3209 = vmatprep.subr.bf16.mxu1 %v3208_v19 }
 0x96b   :  { %3259 = vmatpush3.bf16.msra.mxu0 %v3256_v16 }
 0x96c   :  { %3261 = vmatprep.subr.bf16.mxu0 %v3260_v20 }
 0x96d   :  { %3211 = vmatpush3.bf16.msra.mxu1 %v3208_v19  ;;  %v2453_v19 = vld [vmem:[%s4129_s3 + $0x68] sm:$0xff] }
 0x96f   :  { %3263 = vmatpush3.bf16.msra.mxu0 %v3260_v20 }
 0x982   :  { %v2196_v35 = vpop.xlane.xlu1 %2195 }
 0x983   :  { %3475 = vrcp.f32 %v2196_v35  ;;  %v3264_v35 = vpack.c.bf16 %v2453_v19, %v2452_v21 }
 0x985   :  { %3265 = vmatprep.subr.bf16.mxu0 %v3264_v35 }
 0x986   :  { %v3405_v45 = vpop.permute.xlu1 %3404  ;;  %v1976_v22 = vpop.xlane.xlu0 %1975  ;;  %3267 = vmatpush3.bf16.msra.mxu0 %v3264_v35 }
 0x987   :  { %v3407_v23 = vunpack.i.h.bf16 %v3405_v45  ;;  %v3406_v24 = vunpack.i.l.bf16 %v3405_v45  ;;  %3477 = vrcp.f32 %v1976_v22 }
 0x989   :  { %v3224_v25 = vpack.c.bf16 %v3407_v23, %v3406_v24 }
 0x98a   :  { %v2199_v26 = vpop.xlane.xlu0 %2198 }
 0x98b   :  { %3225 = vmatprep.subr.bf16.mxu1 %v3224_v25  ;;  %3479 = vrcp.f32 %v2199_v26 }
 0x98d   :  { %v3476_v28 = vpop.eup %3475 }
 0x98e   :  { %v3410_v41 = vpop.permute.xlu0 %3409  ;;  %v2202_v36 = vmul.f32 %v3476_v28, %v3994_v59 }
 0x98f   :  { %v3412_v30 = vunpack.i.h.bf16 %v3410_v41  ;;  %v3411_v31 = vunpack.i.l.bf16 %v3410_v41 }
 0x991   :  { %v3478_v29 = vpop.eup %3477  ;;  %v3228_v37 = vpack.c.bf16 %v3412_v30, %v3411_v31  ;;  %v2676_v31 = vld [vmem:[#allocation5 + $0xa] ss:$0 sm:$0xff] }
 0x992   :  { %v1982_v32 = vmul.f32 %v3478_v29, %v3998_v61  ;;  %v2349_v61 = vld [vmem:[%s4128_s2 + $0x30] sm:$0xff] }
 0x993   :  { %v3232_v62 = vpack.c.bf16 %v2349_v61, %v2348_v60 }
 0x994   :  { %3001 = vmatprep.mubr.msk.f32.mxu1 %vm64_vm0, %v1982_v32 }
 0x995   :  { %3002 = vmatmul.mubr.msk.f32.vlgmr.msra.gmra.mrb[16].mxu1 %vm64_vm0, %v1983_v33  ;;  %v3480_v42 = vpop.eup %3479 }
 0x996   :  { %3227 = vmatpush3.bf16.msra.mxu1 %v3224_v25  ;;  %3023 = vmatprep.mubr.msk.f32.mxu1 %vm64_vm0, %v2202_v36  ;;  %v2203_v27 = vmul.f32 %v3480_v42, %v4002_v3  ;;  %v2350_v3 = vld [vmem:[%s4128_s2 + $0x50] sm:$0xff] }
 0x997   :  { %3229 = vmatprep.subr.bf16.mxu1 %v3228_v37  ;;  %v3236_v8 = vpack.c.bf16 %v2351_v6, %v2350_v3  ;;  %v2454_v42 = vld [vmem:[%s4129_s3 + $0x70] sm:$0xff] }
 0x99a   :  { %3231 = vmatpush3.bf16.msra.mxu1 %v3228_v37 }
 0x99b   :  { %3233 = vmatprep.subr.bf16.mxu1 %v3232_v62 }
 0x99d   :  { %3024 = vmatmul.mubr.msk.f32.vlgmr.msra.gmra.mrb[16].mxu1 %vm64_vm0, %v2203_v27  ;;  %v2455_v27 = vld [vmem:[%s4129_s3 + $0x78] sm:$0xff]  ;;  %s3574_s3 = smov [#allocation7]  }
 0x99e   :  { %3235 = vmatpush3.bf16.msra.mxu1 %v3232_v62  ;;  %s2585_s21 = sshll.u32 %s3574_s3, 4  ;;  %s2586_s21 = int_to_ptr.vmem [resolvable:$true] %s2585_s21 }
 0x99f   :  { %3237 = vmatprep.subr.bf16.mxu1 %v3236_v8  ;;  %s3533_s22 = scalar_lea.vmem %s2586_s21, 256  ;;  %p3538_p3 = scmp.lt.s32.totalorder %s2586_s21, %s2586_s21 }
 0x9a0   :  { %p3534_p2 = scmp.ne.s32.totalorder %s2586_s21, %s3533_s22  ;;  %p3539_p4 = scmp.lt.s32.totalorder %s3533_s22, %s3533_s22 }
 0x9a2   :  { %3239 = vmatpush3.bf16.msra.mxu1 %v3236_v8  ;;  %p3540_p5 = por %p3539_p4, %p3538_p3 }
 0x9a4   :  { %p3541_p6 = pnand %p3540_p5, %p3534_p2 }
 0xa70   :  { %v3025_v44 = vpop.f32.mrb[16].mxu1 }
 0xa71   :  { %v2305_v34 = vadd.f32 %v3025_v44, %v2674_v43  ;;  %v2288_v47 = vpop.f32.mrb[17].mxu1  ;;  %v2677_v44 = vld [vmem:[#allocation5 + $0x5] ss:$0 sm:$0xff] }
 0xa72   :  { %v2304_v49 = vadd.f32 %v2674_v43, %v2288_v47  ;;  %v3268_v43 = vpack.c.bf16 %v2455_v27, %v2454_v42 }
 0xa73   :  { %v2307_v50 = vadd.f32 %v2305_v34, %v3848_v39 }
 0xa74   :  { %v2306_v51 = vadd.f32 %v2304_v49, %v3846_v38  ;;  %3269 = vmatprep.subr.bf16.mxu0 %v3268_v43 }
 0xa75   :  { %v2313_v52 = vsel %vm64_vm0, %v2307_v50, 0.0  ;;  %3271 = vmatpush3.bf16.msra.mxu0 %v3268_v43 }
 0xa76   :  { %2314 = vadd.xlane.f32.xlu0 %v2313_v52  ;;  %v2310_v53 = vsel %vm64_vm0, %v2306_v51, 0.0 }
 0xa77   :  { %2311 = vadd.xlane.f32.xlu1 %v2310_v53  ;;  %v2680_v53 = vld [vmem:[#allocation5 + $0x6] ss:$0 sm:$0xff] }
 0xb03   :  { %v2315_v54 = vpop.xlane.xlu0 %2314 }
 0xb04   :  { %v2317_v55 = vmul.f32 0.03125, %v2315_v54  ;;  %v2312_v57 = vpop.xlane.xlu1 %2311 }
 0xb05   :  { %v2316_v56 = vmul.f32 0.03125, %v2312_v57 }
 0xb06   :  { %v4031_v58 = vsub.f32 %v2307_v50, %v2317_v55 }
 0xb07   :  { %v4033_v7 = vsub.f32 %v2306_v51, %v2316_v56 }
 0xb08   :  { %v2321_v5 = vmul.f32 %v4031_v58, %v4031_v58 }
 0xb09   :  { %v2320_v38 = vmul.f32 %v4033_v7, %v4033_v7 }
 0xb0a   :  { %v2325_v39 = vsel %vm64_vm0, %v2321_v5, 0.0 }
 0xb0b   :  { %2326 = vadd.xlane.f32.xlu1 %v2325_v39  ;;  %v2322_v59 = vsel %vm64_vm0, %v2320_v38, 0.0 }
 0xb0c   :  { %2323 = vadd.xlane.f32.xlu0 %v2322_v59 }
 0xb98   :  { %v2327_v45 = vpop.xlane.xlu1 %2326 }
 0xb99   :  { %v2329_v22 = vmul.f32 0.03125, %v2327_v45  ;;  %v2324_v23 = vpop.xlane.xlu0 %2323 }
 0xb9a   :  { %v2328_v24 = vmul.f32 0.03125, %v2324_v23 }
 0xb9b   :  { %v2331_v25 = vadd.f32 1e-05, %v2329_v22 }
 0xb9c   :  { %v2330_v26 = vadd.f32 1e-05, %v2328_v24 }
 0xb9d   :  { %3481 = vrsqrt.f32 %v2331_v25 }
 0xb9e   :  { %3483 = vrsqrt.f32 %v2330_v26 }
 0xba7   :  { %v3482_v41 = vpop.eup %3481 }
 0xba8   :  { %v3484_v28 = vpop.eup %3483  ;;  %v2335_v29 = vmul.f32 %v3482_v41, %v4031_v58 }
 0xba9   :  { %v2334_v30 = vmul.f32 %v3484_v28, %v4033_v7 }
 0xbaa   :  { %v2341_v32 = vmul.f32 %v2675_v48, %v2335_v29 }
 0xbab   :  { %v2340_v33 = vmul.f32 %v2675_v48, %v2334_v30 }
 0xbac   :  { %v2347_v37 = vadd.f32 %v2676_v31, %v2341_v32 }
 0xbad   :  { %v2346_v36 = vadd.f32 %v2676_v31, %v2340_v33 }
 0xbaf   :  { %3034 = vmatprep.mubr.msk.f32.mxu1 %vm64_vm0, %v2346_v36 }
 0xbb0   :  { %3035 = vmatmul.mubr.msk.f32.vlgmr.msra.gmra.mrb[18].mxu1 %vm64_vm0, %v2347_v37 }
 0xc83   :  { %v3036_v34 = vpop.f32.mrb[18].mxu1 }
 0xc84   :  { %v2435_v47 = vadd.f32 %v3036_v34, %v2677_v44  ;;  %v2429_v49 = vpop.f32.mrb[19].mxu1 }
 0xc85   :  { %v2430_v50 = vadd.f32 %v2677_v44, %v2429_v49 }
 0xc86   :  { %v2439_v52 = vmax.f32 %v2435_v47, 0.0 }
 0xc87   :  { %v2438_v51 = vmax.f32 %v2430_v50, 0.0 }
 0xc89   :  { %3069 = vmatprep.mubr.f32.mxu0 %v2438_v51 }
 0xc8a   :  { %3070 = vmatmul.mubr.f32.vlgmr.msra.gmra.mrb[16].mxu0 %v2439_v52 }
 0xd5d   :  { %v3071_v54 = vpop.f32.mrb[16].mxu0 }
 0xd5e   :  { %v2533_v55 = vadd.f32 %v3071_v54, %v2680_v53  ;;  %v2527_v57 = vpop.f32.mrb[17].mxu0 }
 0xd5f   :  { %v2528_v56 = vadd.f32 %v2680_v53, %v2527_v57 }
 0xd60   :  { %v2537_v58 = vadd.f32 %v2533_v55, %v2347_v37 }
 0xd61   :  { %v2536_v7 = vadd.f32 %v2528_v56, %v2346_v36 }
 0xd62   :  { %v2543_v5 = vsel %vm64_vm0, %v2537_v58, 0.0 }
 0xd63   :  { %2544 = vadd.xlane.f32.xlu1 %v2543_v5  ;;  %v2540_v38 = vsel %vm64_vm0, %v2536_v7, 0.0 }
 0xd64   :  { %2541 = vadd.xlane.f32.xlu0 %v2540_v38 }
 0xdf0   :  { %v2545_v39 = vpop.xlane.xlu1 %2544 }
 0xdf1   :  { %v2547_v59 = vmul.f32 0.03125, %v2545_v39  ;;  %v2542_v60 = vpop.xlane.xlu0 %2541 }
 0xdf2   :  { %v2546_v61 = vmul.f32 0.03125, %v2542_v60 }
 0xdf3   :  { %v2549_v62 = vsub.f32 %v2537_v58, %v2547_v59 }
 0xdf4   :  { %v2548_v3 = vsub.f32 %v2536_v7, %v2546_v61 }
 0xdf5   :  { %v2551_v6 = vmul.f32 %v2549_v62, %v2549_v62 }
 0xdf6   :  { %v2550_v8 = vmul.f32 %v2548_v3, %v2548_v3 }
 0xdf7   :  { %v2555_v9 = vsel %vm64_vm0, %v2551_v6, 0.0 }
 0xdf8   :  { %2556 = vadd.xlane.f32.xlu1 %v2555_v9  ;;  %v2552_v2 = vsel %vm64_vm0, %v2550_v8, 0.0 }
 0xdf9   :  { %2553 = vadd.xlane.f32.xlu0 %v2552_v2 }
 0xe85   :  { %v2557_v4 = vpop.xlane.xlu1 %2556 }
 0xe86   :  { %v2559_v10 = vmul.f32 0.03125, %v2557_v4  ;;  %v2554_v0 = vpop.xlane.xlu0 %2553 }
 0xe87   :  { %v2558_v1 = vmul.f32 0.03125, %v2554_v0 }
 0xe88   :  { %v2561_v63 = vadd.f32 1e-05, %v2559_v10 }
 0xe89   :  { %v2560_v11 = vadd.f32 1e-05, %v2558_v1 }
 0xe8a   :  { %3485 = vrsqrt.f32 %v2561_v63 }
 0xe8b   :  { %3487 = vrsqrt.f32 %v2560_v11 }
 0xe94   :  { %v3486_v12 = vpop.eup %3485 }
 0xe95   :  { %v3488_v46 = vpop.eup %3487  ;;  %v2565_v40 = vmul.f32 %v3486_v12, %v2549_v62 }
 0xe96   :  { %v2564_v14 = vmul.f32 %v3488_v46, %v2548_v3 }
 0xe97   :  { %v2571_v16 = vmul.f32 %v2681_v13, %v2565_v40 }
 0xe98   :  { %v2570_v17 = vmul.f32 %v2681_v13, %v2564_v14 }
 0xe99   :  { %v2577_v18 = vadd.f32 %v2682_v15, %v2571_v16 }
 0xe9a   :  { %v2576_v20 = vadd.f32 %v2682_v15, %v2570_v17 }
 0xe9b   :  { %2579 = vst.msk [vmem:[#allocation7 + $0x8] sm:$0xff] %vm64_vm0, %v2577_v18 }
 0xe9c   :  { %2578 = vst.msk [vmem:[#allocation7] sm:$0xff] %vm64_vm0, %v2576_v20 }
 0xe9d   :  { %3544 = shalt.err (!%p3541_p6)
}
 0xe9e   :  { %s3545_s4 = scalar_lea.hbm %s4131_s5, 256 }
 0xe9f   :  { %p3546_p7 = scmp.ne.s32.totalorder %s4131_s5, %s3545_s4  ;;  %p3549_p8 = scmp.lt.u32.totalorder %s3545_s4, %s4131_s5 }
 0xea1   :  { %p3551_p9 = pnand %p3549_p8, %p3546_p7 }
 0xea3   :  { %3554 = shalt.err (!%p3551_p9)
}
 0xea4   :  { %2591 = dma.vmem_to_hbm [thread:$0]  %s2586_s21, 256, %s4131_s5, [#allocation4], %s3562_s28, %s3562_s28, %s3563_s29  }
 0xea5   :  { %3559 = dma.done.wait [#allocation4], 256  }
 0xea6   :  { %3560 = vsyncadd [#allocation4], 4294967040 }
 0xea7   :  { %2595 = vsyncpa [#allocation3], 1 }
 0xea8   :  { %2596 = vsyncpa [#allocation6], 1 }
 0xea9   :  { %2597 = vsyncpa [#allocation4], 1 }

</bundles_post_ra>
